<compile_context>
chip_gen: v7x
topology: tpu7x:2x2x1
jax: 0.10.0
libtpu: 0.0.40
codegen_flags: <defaults>
</compile_context>

<pallas_src>
import functools

import jax
import jax.numpy as jnp
import numpy as np
from jax import lax
from jax.experimental import pallas as pl
from jax.experimental.pallas import tpu as pltpu

NEG_INF = -1e30  # finite "masked" value; avoids -inf NaN issues in online softmax


def _doc_attn_kernel(kv_lo_ref, kv_cnt_ref,                  # scalar prefetch (SMEM)
                     docq_ref, dock_ref, q_ref, k_ref, v_ref,  # inputs (VMEM)
                     o_ref,                                    # output
                     m_sc, l_sc, acc_sc,                       # scratch
                     *, scale, mm_dtype):
    qi = pl.program_id(1)
    ki = pl.program_id(2)
    cnt = kv_cnt_ref[qi]  # number of live kv blocks for this q tile

    @pl.when(ki == 0)
    def _init():
        m_sc[...] = jnp.full_like(m_sc, NEG_INF)
        l_sc[...] = jnp.zeros_like(l_sc)
        acc_sc[...] = jnp.zeros_like(acc_sc)

    # Skip fully-masked (dead) kv blocks entirely: no scores, no exp, no matmul.
    # Their K/V DMAs are also elided because the index_map clamps the block
    # index to the last live block (unchanged index -> no new copy).
    @pl.when(ki < cnt)
    def _compute():
        q = q_ref[0]  # (tq, D)
        k = k_ref[0]  # (tk, D)
        v = v_ref[0]  # (tk, D)

        # Fold the softmax scale into q (cheaper: (tq, D) instead of (tq, tk)).
        qm = (q * scale).astype(mm_dtype)
        km = k.astype(mm_dtype)

        # QK^T as an NT contraction on D (no k.T -> no XLU transpose).
        s = lax.dot_general(
            qm, km,
            dimension_numbers=(((1,), (1,)), ((), ())),
            preferred_element_type=jnp.float32)                 # (tq, tk)

        # Document mask: (tq, 1) == (1, tk) -> (tq, tk)
        mask = docq_ref[...] == dock_ref[...]
        s = jnp.where(mask, s, NEG_INF)

        # Online softmax update (f32 math throughout).
        m_prev = m_sc[...]                                          # (tq, 1)
        m_new = jnp.maximum(m_prev, s.max(axis=-1, keepdims=True))  # (tq, 1)
        alpha = jnp.exp(m_prev - m_new)
        # Explicitly zero masked probabilities so rows with no valid kv in this
        # tile contribute nothing (robust even before any live column is seen).
        p = jnp.where(mask, jnp.exp(s - m_new), 0.0)                # (tq, tk)
        l_sc[...] = alpha * l_sc[...] + p.sum(axis=-1, keepdims=True)
        acc_sc[...] = alpha * acc_sc[...] + jnp.dot(
            p.astype(mm_dtype), v.astype(mm_dtype),
            preferred_element_type=jnp.float32)
        m_sc[...] = m_new

    @pl.when(ki == pl.num_programs(2) - 1)
    def _finalize():
        # Every query row attends at least to itself, so l > 0.
        inv_l = pl.reciprocal(l_sc[...], approx=True)
        o_ref[0] = (acc_sc[...] * inv_l).astype(o_ref.dtype)


def document_mask_attention(Q, K, V, document_id, *, tq=256, tk=256,
                            matmul_dtype=None):
    """Q, K, V: [B, H, N, D] with B == 1; document_id: int [N] (or [1, N]).

    matmul_dtype: optional dtype (e.g. jnp.bfloat16) for the MXU operands of
    both matmuls; softmax math and accumulation stay in f32.  None = follow
    the input dtype (preserves the reference numerics).
    """
    B, H, N, D = Q.shape
    if B != 1:
        raise NotImplementedError("B must be 1 (packed-sequence use case).")
    document_id = jnp.asarray(document_id)
    if document_id.ndim == 2:
        assert document_id.shape[0] == 1
        document_id = document_id[0]
    assert document_id.shape == (N,)

    tq = min(tq, N)
    tk = min(tk, N)
    assert N % tq == 0 and N % tk == 0

    scale = 1.0 / float(np.sqrt(D))  # flex_attention default scale
    mm_dtype = jnp.dtype(matmul_dtype) if matmul_dtype is not None else Q.dtype

    q, k, v = Q[0], K[0], V[0]
    doc = document_id.astype(jnp.int32)
    docq = doc.reshape(N, 1)
    dock = doc.reshape(1, N)

    nq, nk = N // tq, N // tk

    # ---- block-sparsity schedule (cheap XLA ops, replaces create_block_mask) ----
    # Per-block doc-id [min, max] interval overlap.  For packed (contiguous)
    # documents this is exactly the contiguous set of live kv blocks per q tile;
    # for arbitrary layouts it is a conservative superset (still correct, the
    # in-kernel mask handles the rest).
    dq = doc.reshape(nq, tq)
    dk = doc.reshape(nk, tk)
    q_lo, q_hi = dq.min(axis=1), dq.max(axis=1)
    k_lo, k_hi = dk.min(axis=1), dk.max(axis=1)
    overlap = (k_lo[None, :] <= q_hi[:, None]) & (k_hi[None, :] >= q_lo[:, None])
    ki_idx = jnp.arange(nk, dtype=jnp.int32)
    kv_lo = jnp.min(jnp.where(overlap, ki_idx[None, :], nk), axis=1).astype(jnp.int32)
    kv_hi = jnp.max(jnp.where(overlap, ki_idx[None, :], -1), axis=1).astype(jnp.int32)
    kv_cnt = (kv_hi - kv_lo + 1).astype(jnp.int32)   # >= 1 (q attends to itself)

    def _kv_block(qi, ki, lo_ref, cnt_ref):
        # Clamp dead steps to the last live block so no new K/V DMA is issued
        # for skipped (fully masked) kv tiles.
        return lo_ref[qi] + jnp.minimum(ki, cnt_ref[qi] - 1)

    kernel = functools.partial(_doc_attn_kernel, scale=scale, mm_dtype=mm_dtype)

    grid = (H, nq, nk)
    # TODO(synk): if skipped blocks expose K/V DMA latency, add
    # pipeline_mode=pl.Buffered(3) to the K/V specs; also consider a lane-dense
    # [N, H*D] output layout (both are low-priority tuning knobs).
    out = pl.pallas_call(
        kernel,
        out_shape=jax.ShapeDtypeStruct((H, N, D), Q.dtype),
        grid_spec=pltpu.PrefetchScalarGridSpec(
            num_scalar_prefetch=2,
            grid=grid,
            in_specs=[
                # doc id (query side), (N, 1)
                pl.BlockSpec((tq, 1), lambda h, qi, ki, lo, cnt: (qi, 0)),
                # doc id (kv side), (1, N)
                pl.BlockSpec((1, tk),
                             lambda h, qi, ki, lo, cnt:
                             (0, _kv_block(qi, ki, lo, cnt))),
                # Q
                pl.BlockSpec((1, tq, D), lambda h, qi, ki, lo, cnt: (h, qi, 0)),
                # K
                pl.BlockSpec((1, tk, D),
                             lambda h, qi, ki, lo, cnt:
                             (h, _kv_block(qi, ki, lo, cnt), 0)),
                # V
                pl.BlockSpec((1, tk, D),
                             lambda h, qi, ki, lo, cnt:
                             (h, _kv_block(qi, ki, lo, cnt), 0)),
            ],
            out_specs=pl.BlockSpec((1, tq, D), lambda h, qi, ki, lo, cnt: (h, qi, 0)),
            scratch_shapes=[
                pltpu.VMEM((tq, 1), jnp.float32),  # running max
                pltpu.VMEM((tq, 1), jnp.float32),  # running denom
                pltpu.VMEM((tq, D), jnp.float32),  # running numerator
            ],
        ),
        compiler_params=pltpu.CompilerParams(
            dimension_semantics=("parallel", "parallel", "arbitrary")),
    )(kv_lo, kv_cnt, docq, dock, q, k, v)

    return out[None]  # back to [B, H, N, D]


def _reference(Q, K, V, document_id):
    B, H, N, D = Q.shape
    scale = 1.0 / float(np.sqrt(D))
    s = jnp.einsum("bhqd,bhkd->bhqk",
                   Q.astype(jnp.float32), K.astype(jnp.float32)) * scale
    mask = document_id[:, None] == document_id[None, :]
    s = jnp.where(mask[None, None], s, -jnp.inf)
    p = jax.nn.softmax(s, axis=-1)
    return jnp.einsum("bhqk,bhkd->bhqd", p, V.astype(jnp.float32)).astype(Q.dtype)


if __name__ == "__main__":
    key = jax.random.PRNGKey(0)
    B, H, N, D = 1, 4, 512, 64
    kq, kk, kv = jax.random.split(key, 3)
    Q = jax.random.normal(kq, (B, H, N, D), dtype=jnp.float32)
    K = jax.random.normal(kk, (B, H, N, D), dtype=jnp.float32)
    V = jax.random.normal(kv, (B, H, N, D), dtype=jnp.float32)

    # Deterministic packed documents whose boundaries cross 128-token tiles.
    doc_lengths = [200, 150, 162]
    document_id = jnp.asarray(
        np.repeat(np.arange(len(doc_lengths)), doc_lengths), dtype=jnp.int32)

    ref = _reference(Q, K, V, document_id)

    # 1) f32 path, 128 tiles: exercises block skipping + clamped K/V index map
    #    (per-q-tile live kv-block counts here are [2, 3, 3, 2] of 4).
    out = document_mask_attention(Q, K, V, document_id, tq=128, tk=128)
    out = jax.block_until_ready(out)
    np.testing.assert_allclose(np.asarray(out), np.asarray(ref),
                               atol=5e-3, rtol=5e-3)

    # 2) bf16 MXU operands (v5e/v6e/v7x fast path), default 256 tiles.
    out_bf16 = document_mask_attention(Q, K, V, document_id,
                                       matmul_dtype=jnp.bfloat16)
    out_bf16 = jax.block_until_ready(out_bf16)
    np.testing.assert_allclose(np.asarray(out_bf16), np.asarray(ref),
                               atol=6e-2, rtol=6e-2)

    print("KERNEL_OK")
</pallas_src>

<mosaic_0001>
module attributes {stable_mosaic.version = 11 : i64} {
  func.func @_doc_attn_kernel(%arg0: i32, %arg1: i32, %arg2: i32, %arg3: memref<4xi32, #tpu.memory_space<smem>>, %arg4: memref<4xi32, #tpu.memory_space<smem>>, %arg5: memref<128x1xi32, #tpu.memory_space<vmem>>, %arg6: memref<1x128xi32, #tpu.memory_space<vmem>>, %arg7: memref<1x128x64xf32, #tpu.memory_space<vmem>>, %arg8: memref<1x128x64xf32, #tpu.memory_space<vmem>>, %arg9: memref<1x128x64xf32, #tpu.memory_space<vmem>>, %arg10: memref<1x128x64xf32, #tpu.memory_space<vmem>>, %arg11: memref<128x1xf32, #tpu.memory_space<vmem>>, %arg12: memref<128x1xf32, #tpu.memory_space<vmem>>, %arg13: memref<128x64xf32, #tpu.memory_space<vmem>>) attributes {dimension_semantics = [#tpu.dimension_semantics<parallel>, #tpu.dimension_semantics<parallel>, #tpu.dimension_semantics<arbitrary>], iteration_bounds = array<i64: 4, 4, 4>, scalar_prefetch = 2 : i64, scratch_operands = 3 : i64, tpu.core_type = #tpu.core_type<tc>, window_params = [{transform_indices = @transform_0, window_bounds = array<i64: 128, 1>}, {transform_indices = @transform_1, window_bounds = array<i64: 1, 128>}, {transform_indices = @transform_2, window_bounds = array<i64: 1, 128, 64>}, {transform_indices = @transform_3, window_bounds = array<i64: 1, 128, 64>}, {transform_indices = @transform_4, window_bounds = array<i64: 1, 128, 64>}, {transform_indices = @transform_5, window_bounds = array<i64: 1, 128, 64>}]} {
    %0 = arith.index_cast %arg1 : i32 to index
    %1 = memref.load %arg4[%0] : memref<4xi32, #tpu.memory_space<smem>>
    %c0_i32 = arith.constant 0 : i32
    %2 = arith.cmpi eq, %arg2, %c0_i32 : i32
    %3 = arith.extui %2 : i1 to i32
    %c0_i32_0 = arith.constant 0 : i32
    %4 = arith.cmpi ne, %3, %c0_i32_0 : i32
    scf.if %4 {
      %cst = arith.constant -1.000000e+30 : f32
      %11 = vector.broadcast %cst : f32 to vector<128x1xf32>
      %c0 = arith.constant 0 : index
      %c0_3 = arith.constant 0 : index
      %12 = vector.load %arg11[%c0, %c0_3] : memref<128x1xf32, #tpu.memory_space<vmem>>, vector<128x1xf32>
      tpu.vector_store %arg11[%c0, %c0_3], %11 {strides = array<i32>} : memref<128x1xf32, #tpu.memory_space<vmem>>, vector<128x1xf32>,
      %cst_4 = arith.constant 0.000000e+00 : f32
      %13 = vector.broadcast %cst_4 : f32 to vector<128x1xf32>
      %c0_5 = arith.constant 0 : index
      %c0_6 = arith.constant 0 : index
      %14 = vector.load %arg12[%c0_5, %c0_6] : memref<128x1xf32, #tpu.memory_space<vmem>>, vector<128x1xf32>
      tpu.vector_store %arg12[%c0_5, %c0_6], %13 {strides = array<i32>} : memref<128x1xf32, #tpu.memory_space<vmem>>, vector<128x1xf32>,
      %cst_7 = arith.constant 0.000000e+00 : f32
      %15 = vector.broadcast %cst_7 : f32 to vector<128x64xf32>
      %c0_8 = arith.constant 0 : index
      %c0_9 = arith.constant 0 : index
      %16 = vector.load %arg13[%c0_8, %c0_9] : memref<128x64xf32, #tpu.memory_space<vmem>>, vector<128x64xf32>
      tpu.vector_store %arg13[%c0_8, %c0_9], %15 {strides = array<i32>} : memref<128x64xf32, #tpu.memory_space<vmem>>, vector<128x64xf32>,
    } else {
    }
    %5 = arith.cmpi slt, %arg2, %1 : i32
    %6 = arith.extui %5 : i1 to i32
    %c0_i32_1 = arith.constant 0 : i32
    %7 = arith.cmpi ne, %6, %c0_i32_1 : i32
    scf.if %7 {
      %c0 = arith.constant 0 : index
      %c0_3 = arith.constant 0 : index
      %c0_4 = arith.constant 0 : index
      %11 = vector.load %arg7[%c0, %c0_3, %c0_4] : memref<1x128x64xf32, #tpu.memory_space<vmem>>, vector<1x128x64xf32>
      %12 = vector.shape_cast %11 : vector<1x128x64xf32> to vector<128x64xf32>
      %c0_5 = arith.constant 0 : index
      %c0_6 = arith.constant 0 : index
      %c0_7 = arith.constant 0 : index
      %13 = vector.load %arg8[%c0_5, %c0_6, %c0_7] : memref<1x128x64xf32, #tpu.memory_space<vmem>>, vector<1x128x64xf32>
      %14 = vector.shape_cast %13 : vector<1x128x64xf32> to vector<128x64xf32>
      %c0_8 = arith.constant 0 : index
      %c0_9 = arith.constant 0 : index
      %c0_10 = arith.constant 0 : index
      %15 = vector.load %arg9[%c0_8, %c0_9, %c0_10] : memref<1x128x64xf32, #tpu.memory_space<vmem>>, vector<1x128x64xf32>
      %16 = vector.shape_cast %15 : vector<1x128x64xf32> to vector<128x64xf32>
      %cst = arith.constant 1.250000e-01 : f32
      %17 = vector.broadcast %cst : f32 to vector<128x64xf32>
      %18 = arith.mulf %12, %17 : vector<128x64xf32>
      %cst_11 = arith.constant dense<0.000000e+00> : vector<128x128xf32>
      %19 = tpu.matmul %18, %14, %cst_11 {dimension_numbers = #tpu.dot_dimension_numbers<[1], [1], [0], [0], [0, 0, 1, 0], [], []>} : vector<128x64xf32>, vector<128x64xf32>, vector<128x128xf32> -> vector<128x128xf32>
      %c0_12 = arith.constant 0 : index
      %c0_13 = arith.constant 0 : index
      %20 = vector.load %arg5[%c0_12, %c0_13] : memref<128x1xi32, #tpu.memory_space<vmem>>, vector<128x1xi32>
      %c0_14 = arith.constant 0 : index
      %c0_15 = arith.constant 0 : index
      %21 = vector.load %arg6[%c0_14, %c0_15] : memref<1x128xi32, #tpu.memory_space<vmem>>, vector<1x128xi32>
      %22 = vector.broadcast %20 : vector<128x1xi32> to vector<128x128xi32>
      %23 = vector.broadcast %21 : vector<1x128xi32> to vector<128x128xi32>
      %24 = arith.cmpi eq, %22, %23 : vector<128x128xi32>
      %cst_16 = arith.constant -1.000000e+30 : f32
      %25 = vector.broadcast %cst_16 : f32 to vector<128x128xf32>
      %26 = arith.select %24, %19, %25 : vector<128x128xi1>, vector<128x128xf32>
      %c0_17 = arith.constant 0 : index
      %c0_18 = arith.constant 0 : index
      %27 = vector.load %arg11[%c0_17, %c0_18] : memref<128x1xf32, #tpu.memory_space<vmem>>, vector<128x1xf32>
      %cst_19 = arith.constant dense<0xFF800000> : vector<128xf32>
      %28 = vector.multi_reduction <maximumf>, %26, %cst_19 [1] : vector<128x128xf32> to vector<128xf32>
      %29 = vector.shape_cast %28 : vector<128xf32> to vector<128x1xf32>
      %30 = arith.maximumf %27, %29 : vector<128x1xf32>
      %31 = arith.subf %27, %30 : vector<128x1xf32>
      %32 = math.exp %31 : vector<128x1xf32>
      %33 = vector.broadcast %30 : vector<128x1xf32> to vector<128x128xf32>
      %34 = arith.subf %26, %33 : vector<128x128xf32>
      %35 = math.exp %34 : vector<128x128xf32>
      %cst_20 = arith.constant 0.000000e+00 : f32
      %36 = vector.broadcast %cst_20 : f32 to vector<128x128xf32>
      %37 = arith.select %24, %35, %36 : vector<128x128xi1>, vector<128x128xf32>
      %c0_21 = arith.constant 0 : index
      %c0_22 = arith.constant 0 : index
      %38 = vector.load %arg12[%c0_21, %c0_22] : memref<128x1xf32, #tpu.memory_space<vmem>>, vector<128x1xf32>
      %39 = arith.mulf %32, %38 : vector<128x1xf32>
      %cst_23 = arith.constant dense<0.000000e+00> : vector<128xf32>
      %40 = vector.multi_reduction <add>, %37, %cst_23 [1] : vector<128x128xf32> to vector<128xf32>
      %41 = vector.shape_cast %40 : vector<128xf32> to vector<128x1xf32>
      %42 = arith.addf %39, %41 : vector<128x1xf32>
      %c0_24 = arith.constant 0 : index
      %c0_25 = arith.constant 0 : index
      %43 = vector.load %arg12[%c0_24, %c0_25] : memref<128x1xf32, #tpu.memory_space<vmem>>, vector<128x1xf32>
      tpu.vector_store %arg12[%c0_24, %c0_25], %42 {strides = array<i32>} : memref<128x1xf32, #tpu.memory_space<vmem>>, vector<128x1xf32>,
      %c0_26 = arith.constant 0 : index
      %c0_27 = arith.constant 0 : index
      %44 = vector.load %arg13[%c0_26, %c0_27] : memref<128x64xf32, #tpu.memory_space<vmem>>, vector<128x64xf32>
      %45 = vector.broadcast %32 : vector<128x1xf32> to vector<128x64xf32>
      %46 = arith.mulf %45, %44 : vector<128x64xf32>
      %cst_28 = arith.constant dense<0.000000e+00> : vector<128x64xf32>
      %47 = tpu.matmul %37, %16, %cst_28 {dimension_numbers = #tpu.dot_dimension_numbers<[1], [0], [0], [1], [0, 0, 1, 1], [], []>} : vector<128x128xf32>, vector<128x64xf32>, vector<128x64xf32> -> vector<128x64xf32>
      %48 = arith.addf %46, %47 : vector<128x64xf32>
      %c0_29 = arith.constant 0 : index
      %c0_30 = arith.constant 0 : index
      %49 = vector.load %arg13[%c0_29, %c0_30] : memref<128x64xf32, #tpu.memory_space<vmem>>, vector<128x64xf32>
      tpu.vector_store %arg13[%c0_29, %c0_30], %48 {strides = array<i32>} : memref<128x64xf32, #tpu.memory_space<vmem>>, vector<128x64xf32>,
      %c0_31 = arith.constant 0 : index
      %c0_32 = arith.constant 0 : index
      %50 = vector.load %arg11[%c0_31, %c0_32] : memref<128x1xf32, #tpu.memory_space<vmem>>, vector<128x1xf32>
      tpu.vector_store %arg11[%c0_31, %c0_32], %30 {strides = array<i32>} : memref<128x1xf32, #tpu.memory_space<vmem>>, vector<128x1xf32>,
    } else {
    }
    %c3_i32 = arith.constant 3 : i32
    %8 = arith.cmpi eq, %arg2, %c3_i32 : i32
    %9 = arith.extui %8 : i1 to i32
    %c0_i32_2 = arith.constant 0 : i32
    %10 = arith.cmpi ne, %9, %c0_i32_2 : i32
    scf.if %10 {
      %c0 = arith.constant 0 : index
      %c0_3 = arith.constant 0 : index
      %11 = vector.load %arg12[%c0, %c0_3] : memref<128x1xf32, #tpu.memory_space<vmem>>, vector<128x1xf32>
      %12 = tpu.reciprocal %11 {approx = true} : vector<128x1xf32> -> vector<128x1xf32>
      %c0_4 = arith.constant 0 : index
      %c0_5 = arith.constant 0 : index
      %13 = vector.load %arg13[%c0_4, %c0_5] : memref<128x64xf32, #tpu.memory_space<vmem>>, vector<128x64xf32>
      %14 = vector.broadcast %12 : vector<128x1xf32> to vector<128x64xf32>
      %15 = arith.mulf %13, %14 : vector<128x64xf32>
      %c0_6 = arith.constant 0 : index
      %c0_7 = arith.constant 0 : index
      %c0_8 = arith.constant 0 : index
      %16 = vector.load %arg10[%c0_6, %c0_7, %c0_8] : memref<1x128x64xf32, #tpu.memory_space<vmem>>, vector<1x128x64xf32>
      %17 = vector.shape_cast %16 : vector<1x128x64xf32> to vector<128x64xf32>
      %18 = vector.shape_cast %15 : vector<128x64xf32> to vector<1x128x64xf32>
      tpu.vector_store %arg10[%c0_6, %c0_7, %c0_8], %18 {strides = array<i32>} : memref<1x128x64xf32, #tpu.memory_space<vmem>>, vector<1x128x64xf32>,
    } else {
    }
    return
  }
  func.func @transform_0(%arg0: i32, %arg1: i32, %arg2: i32, %arg3: memref<4xi32, #tpu.memory_space<smem>>, %arg4: memref<4xi32, #tpu.memory_space<smem>>) -> (i32, i32) {
    %c0_i32 = arith.constant 0 : i32
    %c0_i32_0 = arith.constant 0 : i32
    return %arg1, %c0_i32 : i32, i32
  }
  func.func @transform_1(%arg0: i32, %arg1: i32, %arg2: i32, %arg3: memref<4xi32, #tpu.memory_space<smem>>, %arg4: memref<4xi32, #tpu.memory_space<smem>>) -> (i32, i32) {
    %0 = arith.index_cast %arg1 : i32 to index
    %1 = memref.load %arg3[%0] : memref<4xi32, #tpu.memory_space<smem>>
    %2 = arith.index_cast %arg1 : i32 to index
    %3 = memref.load %arg4[%2] : memref<4xi32, #tpu.memory_space<smem>>
    %c1_i32 = arith.constant 1 : i32
    %4 = arith.subi %3, %c1_i32 : i32
    %5 = arith.minsi %arg2, %4 : i32
    %6 = arith.addi %1, %5 : i32
    %c0_i32 = arith.constant 0 : i32
    %c0_i32_0 = arith.constant 0 : i32
    return %c0_i32, %6 : i32, i32
  }
  func.func @transform_2(%arg0: i32, %arg1: i32, %arg2: i32, %arg3: memref<4xi32, #tpu.memory_space<smem>>, %arg4: memref<4xi32, #tpu.memory_space<smem>>) -> (i32, i32, i32) {
    %c0_i32 = arith.constant 0 : i32
    %c0_i32_0 = arith.constant 0 : i32
    return %arg0, %arg1, %c0_i32 : i32, i32, i32
  }
  func.func @transform_3(%arg0: i32, %arg1: i32, %arg2: i32, %arg3: memref<4xi32, #tpu.memory_space<smem>>, %arg4: memref<4xi32, #tpu.memory_space<smem>>) -> (i32, i32, i32) {
    %0 = arith.index_cast %arg1 : i32 to index
    %1 = memref.load %arg3[%0] : memref<4xi32, #tpu.memory_space<smem>>
    %2 = arith.index_cast %arg1 : i32 to index
    %3 = memref.load %arg4[%2] : memref<4xi32, #tpu.memory_space<smem>>
    %c1_i32 = arith.constant 1 : i32
    %4 = arith.subi %3, %c1_i32 : i32
    %5 = arith.minsi %arg2, %4 : i32
    %6 = arith.addi %1, %5 : i32
    %c0_i32 = arith.constant 0 : i32
    %c0_i32_0 = arith.constant 0 : i32
    return %arg0, %6, %c0_i32 : i32, i32, i32
  }
  func.func @transform_4(%arg0: i32, %arg1: i32, %arg2: i32, %arg3: memref<4xi32, #tpu.memory_space<smem>>, %arg4: memref<4xi32, #tpu.memory_space<smem>>) -> (i32, i32, i32) {
    %0 = arith.index_cast %arg1 : i32 to index
    %1 = memref.load %arg3[%0] : memref<4xi32, #tpu.memory_space<smem>>
    %2 = arith.index_cast %arg1 : i32 to index
    %3 = memref.load %arg4[%2] : memref<4xi32, #tpu.memory_space<smem>>
    %c1_i32 = arith.constant 1 : i32
    %4 = arith.subi %3, %c1_i32 : i32
    %5 = arith.minsi %arg2, %4 : i32
    %6 = arith.addi %1, %5 : i32
    %c0_i32 = arith.constant 0 : i32
    %c0_i32_0 = arith.constant 0 : i32
    return %arg0, %6, %c0_i32 : i32, i32, i32
  }
  func.func @transform_5(%arg0: i32, %arg1: i32, %arg2: i32, %arg3: memref<4xi32, #tpu.memory_space<smem>>, %arg4: memref<4xi32, #tpu.memory_space<smem>>) -> (i32, i32, i32) {
    %c0_i32 = arith.constant 0 : i32
    %c0_i32_0 = arith.constant 0 : i32
    return %arg0, %arg1, %c0_i32 : i32, i32, i32
  }
}

</mosaic_0001>

<bundles_post_ra>
// kernel: tpu_custom_call.1
= control target key start
LH: loop header
LB: loop body
LE: loop exit
PB: predicated region body
PF: predicated region fallthrough
CT: control target
= control target key end

     0   :  { %s3467_s0 = inlined_call_operand.vmem [shape: s32[4], index: 0, kind: input, shape index: {}]   ;;  %s3468_s2 = inlined_call_operand.vmem [shape: s32[512,1], index: 2, kind: input, shape index: {}]   ;;  %s3469_s3 = inlined_call_operand.vmem [shape: s32[1,512], index: 3, kind: input, shape index: {}]   ;;  %s3470_s4 = inlined_call_operand.vmem [shape: f32[4,512,64], index: 4, kind: input, shape index: {}]   ;;  %s3471_s5 = inlined_call_operand.vmem [shape: f32[4,512,64], index: 5, kind: input, shape index: {}]   ;;  %s3472_s6 = inlined_call_operand.vmem [shape: f32[4,512,64], index: 6, kind: input, shape index: {}]   ;;  %s3473_s7 = inlined_call_operand.vmem [shape: f32[4,512,64], index: 7, kind: output, shape index: {}]   ;;  %s3474_s1 = inlined_call_operand.vmem [shape: s32[4], index: 1, kind: input, shape index: {}]  }
   0x1   :  { %3479 = sst [smem:[#allocation14_spill]] %s3468_s2  ;;  %s12_s26 = sshll.u32 %s3467_s0, 4  ;;  %s13_s26 = int_to_ptr.vmem [resolvable:$true] %s12_s26 }
   0x2   :  { %3480 = sst [smem:[#allocation15_spill]] %s3470_s4  ;;  %s16_s29 = sshll.u32 %s3474_s1, 4  ;;  %s17_s29 = int_to_ptr.vmem [resolvable:$true] %s16_s29 }
   0x3   :  { %3481 = sst [smem:[#allocation16_spill]] %s3473_s7  ;;  %s2459_s30 = scalar_lea.vmem %s13_s26, 16 }
   0x4   :  { %p2460_p0 = scmp.ne.s32.totalorder %s13_s26, %s2459_s30  ;;  %p2464_p1 = scmp.lt.s32.totalorder %s13_s26, %s13_s26 }
   0x5   :  { %p2465_p2 = scmp.lt.s32.totalorder %s2459_s30, %s2459_s30 }
   0x7   :  { %p2466_p3 = por %p2465_p2, %p2464_p1 }
   0x9   :  { %p2467_p4 = pnand %p2466_p3, %p2460_p0 }
   0xb   :  { %2470 = shalt.err (!%p2467_p4)  }
   0xc   :  { %s2541_s8 = smov [#allocation6]   ;;  %s2471_s9 = scalar_lea.vmem %s17_s29, 16 }
   0xd   :  { %15 = dma.vmem_to_smem %s13_s26, 16, %s2541_s8, [#allocation5] }
   0xe   :  { %p2472_p5 = scmp.ne.s32.totalorder %s17_s29, %s2471_s9  ;;  %p2476_p6 = scmp.lt.s32.totalorder %s17_s29, %s17_s29 }
   0xf   :  { %p2477_p7 = scmp.lt.s32.totalorder %s2471_s9, %s2471_s9 }
  0x11   :  { %p2478_p8 = por %p2477_p7, %p2476_p6 }
  0x13   :  { %p2479_p9 = pnand %p2478_p8, %p2472_p5 }
  0x15   :  { %2482 = shalt.err (!%p2479_p9)  }
  0x16   :  { %s2542_s0 = smov [#allocation7]  }
  0x17   :  { %19 = dma.vmem_to_smem %s17_s29, 16, %s2542_s0, [#allocation5] }
  0x18   :  { %2511 = dma.done.wait [#allocation5], 32 }
  0x19   :  { %2512 = vsyncadd [#allocation5], 4294967264 }
  0x1a   :  { %21 = sfence }
  0x1b   :  { %s2593_s1 = smov 0   ;;  %s2595_s10 = smov 0  }
  0x1c   :  { %s2597_s11 = smov 0   ;;  %s2599_s12 = smov 0  }
  0x1d   :  { %s2601_s13 = smov 0   ;;  %s2603_s14 = smov 0  }
  0x1e   :  { %s2605_s15 = smov 0  }
  0x1f LB: > { %s39_s16 = sadd.s32 1, %s2527_s12  ;;  %s42_s17 = sadd.s32 1, %s2531_s13  ;;  %s2539_s15 = sphi %s2605_s15, %s27_s15   ;;  %s2535_s14 = sphi %s2603_s14, %s3522_s14   ;;  %s2531_s13 = sphi %s2601_s13, %s3521_s13   ;;  %s2527_s12 = sphi %s2599_s12, %s3520_s12   ;;  %s2523_s11 = sphi %s2597_s11, %s3519_s11   ;;  %s2519_s10 = sphi %s2595_s10, %s3518_s10   ;;  %s2515_s1 = sphi %s2593_s1, %s3517_s1  }
  0x20   : > { %p40_p10 = scmp.ge.s32.totalorder %s39_s16, 4  ;;  %p1969_p11 = scmp.ge.s32.totalorder %s2539_s15, 1 }
  0x21   : > { %p352_p12 = scmp.lt.s32.totalorder %s2539_s15, 65  ;;  %s46_s18 = sadd.s32 1, %s2535_s14 }
  0x22   : > { %s3524_s16 = smov (%p40_p10, %s39_s16), 0  ;;  %s3526_s17 = smov (!%p40_p10, %s42_s17), %s2531_s13 }
  0x23   : > { %3482 = sst [smem:[#allocation9_spill]] %s3524_s16  ;;  %p353_p13 = pnand %p1969_p11, %p352_p12 }
  0x24   : > { %p44_p0 = scmp.ge.s32.totalorder %s3526_s17, 4  ;;  %s1970_s19 = sshll.u32 (!%p353_p13), %s2519_s10, 4 }
  0x25   : > { %356 = sbr.rel (%p353_p13) target bundleno = 1073 (0x431), region = 40  ;;  %s438_s20 = sld [smem:[#allocation6 + %s2519_s10]] (!%p353_p13) }
  0x26   : > { %s3528_s17 = smov (%p44_p0, %s3526_s17), 0  ;;  %s3530_s18 = smov (!%p44_p0, %s46_s18), %s2535_s14 }
  0x27   : > { %3483 = sst [smem:[#allocation10_spill]] %s3528_s17  ;;  %p48_p1 = scmp.ge.s32.totalorder %s3530_s18, 4 }
  0x28   : > { %p433_p2 = scmp.lt.s32.totalorder (!%p353_p13), %s1970_s19, 63  ;;  %s439_s21 = sld [smem:[#allocation7 + %s2519_s10]] (!%p353_p13) }
  0x29   : > { %s3532_s18 = smov (%p48_p1, %s3530_s18), 0  ;;  %p454_p3 = scmp.lt.s32.totalorder (!%p353_p13), %s2523_s11, 3 }
  0x2a   : > { %3484 = sst [smem:[#allocation11_spill]] %s3532_s18  ;;  %s3485_s2 = sld [smem:[#allocation14_spill]] (!%p353_p13) }
  0x2b   : > { %s463_s22 = sld [smem:[#allocation6 + %s2519_s10]] (!%p353_p13)  ;;  %p1987_p10 = scmp.ne.s32.totalorder (!%p353_p13), %s2515_s1, 0 }
  0x2c   : > { %s3534_s19 = smov (!%p433_p2, %s1970_s19), 63  ;;  %s3536_s11 = smov (!%p454_p3, %s2523_s11), 3 }
  0x2d   : > { %s1971_s23 = sshll.u32 %s3534_s19, 3  ;;  %s464_s24 = sld [smem:[#allocation7 + %s2519_s10]]  ;;  %vm522_vm0 = vcmask (!%p1987_p10), 7168   ;;  %vm555_vm1 = vcmask (!%p1987_p10), 523264   ;;  %v2543_v0 = vmov (!%p1987_p10), -1e+30  }
  0x2e   : > { %s2649_s28 = sshll.u32 %s3536_s11, 6  ;;  %s1972_s29 = sadd.s32 4294967295, %s439_s21  ;;  %523 = vst.msk [vmem:[#allocation2] sm:$0xff] (!%p1987_p10), %vm522_vm0, %v2543_v0  ;;  %524 = vst.msk [vmem:[#allocation2 + $0x8] sm:$0xff] (!%p1987_p10), %vm522_vm0, %v2543_v0  ;;  %v2544_v1 = vmov (!%p1987_p10), 0.0  }
  0x2f   : > { %s459_s30 = sadd.s32 %s2649_s28, %s3534_s19  ;;  %p441_p4 = scmp.lt.s32.totalorder %s2515_s1, %s1972_s29  ;;  %525 = vst.msk [vmem:[#allocation2 + $0x10] sm:$0xff] (!%p1987_p10), %vm522_vm0, %v2543_v0  ;;  %526 = vst.msk [vmem:[#allocation2 + $0x18] sm:$0xff] (!%p1987_p10), %vm522_vm0, %v2543_v0 }
  0x30   : > { %s2647_s27 = scalar_lea.vmem %s3485_s2, %s1971_s23  ;;  %s1975_s8 = sshll.u32 %s459_s30, 3  ;;  %527 = vst.msk [vmem:[#allocation2 + $0x20] sm:$0xff] (!%p1987_p10), %vm522_vm0, %v2543_v0  ;;  %528 = vst.msk [vmem:[#allocation2 + $0x28] sm:$0xff] (!%p1987_p10), %vm522_vm0, %v2543_v0 }
  0x31   : > { %s3486_s4 = sld [smem:[#allocation15_spill]]  ;;  %s3487_s7 = sld [smem:[#allocation16_spill]]  ;;  %529 = vst.msk [vmem:[#allocation2 + $0x30] sm:$0xff] (!%p1987_p10), %vm522_vm0, %v2543_v0  ;;  %530 = vst.msk [vmem:[#allocation2 + $0x38] sm:$0xff] (!%p1987_p10), %vm522_vm0, %v2543_v0 }
  0x32   : > { %s485_s17 = sld [smem:[#allocation6 + %s2519_s10]]  ;;  %531 = vst.msk [vmem:[#allocation2 + $0x40] sm:$0xff] (!%p1987_p10), %vm522_vm0, %v2543_v0  ;;  %532 = vst.msk [vmem:[#allocation2 + $0x48] sm:$0xff] (!%p1987_p10), %vm522_vm0, %v2543_v0 }
  0x33   : > { %s442_s16 = scalar_select %p441_p4, %s2515_s1, %s1972_s29 }
  0x34   : > { %s1976_s25 = sadd.s32 4294967295, %s464_s24  ;;  %s486_s23 = sld [smem:[#allocation7 + %s2519_s10]]  ;;  %533 = vst.msk [vmem:[#allocation2 + $0x50] sm:$0xff] (!%p1987_p10), %vm522_vm0, %v2543_v0  ;;  %534 = vst.msk [vmem:[#allocation2 + $0x58] sm:$0xff] (!%p1987_p10), %vm522_vm0, %v2543_v0 }
  0x35   : > { %s443_s11 = sadd.s32 %s442_s16, %s438_s20  ;;  %p466_p5 = scmp.lt.s32.totalorder %s2515_s1, %s1976_s25  ;;  %535 = vst.msk [vmem:[#allocation2 + $0x60] sm:$0xff] (!%p1987_p10), %vm522_vm0, %v2543_v0  ;;  %536 = vst.msk [vmem:[#allocation2 + $0x68] sm:$0xff] (!%p1987_p10), %vm522_vm0, %v2543_v0 }
  0x36   : > { %p444_p6 = scmp.lt.s32.totalorder %s443_s11, 3  ;;  %s2671_s0 = sld [smem:[#allocation7 + %s2519_s10]]  ;;  %537 = vst.msk [vmem:[#allocation2 + $0x70] sm:$0xff] (!%p1987_p10), %vm522_vm0, %v2543_v0  ;;  %538 = vst.msk [vmem:[#allocation2 + $0x78] sm:$0xff] (!%p1987_p10), %vm522_vm0, %v2543_v0 }
  0x37   : > { %s2656_s18 = scalar_lea.vmem %s3486_s4, %s1975_s8  ;;  %s2665_s19 = scalar_lea.vmem %s3487_s7, %s1975_s8  ;;  %539 = vst.msk [vmem:[#allocation3] sm:$0xff] (!%p1987_p10), %vm522_vm0, %v2544_v1  ;;  %540 = vst.msk [vmem:[#allocation3 + $0x8] sm:$0xff] (!%p1987_p10), %vm522_vm0, %v2544_v1 }
  0x38   : > { %s467_s30 = scalar_select %p466_p5, %s2515_s1, %s1976_s25 }
  0x39   : > { %s3538_s11 = smov (!%p444_p6, %s443_s11), 3  ;;  %541 = vst.msk [vmem:[#allocation3 + $0x10] sm:$0xff] (!%p1987_p10), %vm522_vm0, %v2544_v1  ;;  %542 = vst.msk [vmem:[#allocation3 + $0x18] sm:$0xff] (!%p1987_p10), %vm522_vm0, %v2544_v1 }
  0x3a   : > { %s468_s9 = sadd.s32 %s467_s30, %s463_s22  ;;  %s446_s2 = scalar_lea.vmem %s3469_s3, %s3538_s11  ;;  %543 = vst.msk [vmem:[#allocation3 + $0x20] sm:$0xff] (!%p1987_p10), %vm522_vm0, %v2544_v1  ;;  %544 = vst.msk [vmem:[#allocation3 + $0x28] sm:$0xff] (!%p1987_p10), %vm522_vm0, %v2544_v1 }
  0x3b   : > { %s1977_s16 = sshll.u32 %s468_s9, 4  ;;  %s1980_s20 = sadd.s32 4294967295, %s486_s23  ;;  %545 = vst.msk [vmem:[#allocation3 + $0x30] sm:$0xff] (!%p1987_p10), %vm522_vm0, %v2544_v1  ;;  %546 = vst.msk [vmem:[#allocation3 + $0x38] sm:$0xff] (!%p1987_p10), %vm522_vm0, %v2544_v1 }
  0x3c   : > { %p472_p7 = scmp.lt.s32.totalorder %s1977_s16, 63  ;;  %p488_p8 = scmp.lt.s32.totalorder %s2515_s1, %s1980_s20  ;;  %547 = vst.msk [vmem:[#allocation3 + $0x40] sm:$0xff] (!%p1987_p10), %vm522_vm0, %v2544_v1  ;;  %548 = vst.msk [vmem:[#allocation3 + $0x48] sm:$0xff] (!%p1987_p10), %vm522_vm0, %v2544_v1 }
  0x3d   : > { %549 = vst.msk [vmem:[#allocation3 + $0x50] sm:$0xff] (!%p1987_p10), %vm522_vm0, %v2544_v1  ;;  %550 = vst.msk [vmem:[#allocation3 + $0x58] sm:$0xff] (!%p1987_p10), %vm522_vm0, %v2544_v1 }
  0x3e   : > { %s3540_s16 = smov (!%p472_p7, %s1977_s16), 63  ;;  %551 = vst.msk [vmem:[#allocation3 + $0x60] sm:$0xff] (!%p1987_p10), %vm522_vm0, %v2544_v1  ;;  %552 = vst.msk [vmem:[#allocation3 + $0x68] sm:$0xff] (!%p1987_p10), %vm522_vm0, %v2544_v1 }
  0x3f   : > { %s489_s21 = scalar_select %p488_p8, %s2515_s1, %s1980_s20 }
  0x40   : > { %s475_s8 = sadd.s32 %s2649_s28, %s3540_s16  ;;  %553 = vst.msk [vmem:[#allocation3 + $0x70] sm:$0xff] (!%p1987_p10), %vm522_vm0, %v2544_v1  ;;  %554 = vst.msk [vmem:[#allocation3 + $0x78] sm:$0xff] (!%p1987_p10), %vm522_vm0, %v2544_v1 }
  0x41   : > { %s1979_s26 = sshll.u32 %s475_s8, 3  ;;  %s490_s25 = sadd.s32 %s489_s21, %s485_s17  ;;  %556 = vst.msk [vmem:[#allocation4] sm:$0xff] (!%p1987_p10), %vm555_vm1, %v2544_v1  ;;  %557 = vst.msk [vmem:[#allocation4 + $0x8] sm:$0xff] (!%p1987_p10), %vm555_vm1, %v2544_v1 }
  0x42   : > { %s2683_s22 = scalar_lea.vmem %s3471_s5, %s1979_s26  ;;  %s1981_s10 = sshll.u32 %s490_s25, 4  ;;  %558 = vst.msk [vmem:[#allocation4 + $0x10] sm:$0xff] (!%p1987_p10), %vm555_vm1, %v2544_v1  ;;  %559 = vst.msk [vmem:[#allocation4 + $0x18] sm:$0xff] (!%p1987_p10), %vm555_vm1, %v2544_v1 }
  0x43   : > { %p494_p9 = scmp.lt.s32.totalorder %s1981_s10, 63  ;;  %521 = sbr.rel (%p1987_p10) target bundleno = 74 (0x4a), region = 44  ;;  %560 = vst.msk [vmem:[#allocation4 + $0x20] sm:$0xff] (!%p1987_p10), %vm555_vm1, %v2544_v1  ;;  %561 = vst.msk [vmem:[#allocation4 + $0x28] sm:$0xff] (!%p1987_p10), %vm555_vm1, %v2544_v1 }
  0x44   : > { %562 = vst.msk [vmem:[#allocation4 + $0x30] sm:$0xff] (!%p1987_p10), %vm555_vm1, %v2544_v1  ;;  %563 = vst.msk [vmem:[#allocation4 + $0x38] sm:$0xff] (!%p1987_p10), %vm555_vm1, %v2544_v1 }
  0x45   : > { %s3542_s10 = smov (!%p494_p9, %s1981_s10), 63  ;;  %564 = vst.msk [vmem:[#allocation4 + $0x40] sm:$0xff] (!%p1987_p10), %vm555_vm1, %v2544_v1  ;;  %565 = vst.msk [vmem:[#allocation4 + $0x48] sm:$0xff] (!%p1987_p10), %vm555_vm1, %v2544_v1 }
  0x46   : > { %s497_s30 = sadd.s32 %s2649_s28, %s3542_s10  ;;  %566 = vst.msk [vmem:[#allocation4 + $0x50] sm:$0xff] (!%p1987_p10), %vm555_vm1, %v2544_v1  ;;  %567 = vst.msk [vmem:[#allocation4 + $0x58] sm:$0xff] (!%p1987_p10), %vm555_vm1, %v2544_v1 }
  0x47   : > { %s1983_s24 = sshll.u32 %s497_s30, 3  ;;  %568 = vst.msk [vmem:[#allocation4 + $0x60] sm:$0xff] (!%p1987_p10), %vm555_vm1, %v2544_v1  ;;  %569 = vst.msk [vmem:[#allocation4 + $0x68] sm:$0xff] (!%p1987_p10), %vm555_vm1, %v2544_v1 }
  0x48   : > { %s2689_s23 = scalar_lea.vmem %s3472_s6, %s1983_s24  ;;  %570 = vst.msk [vmem:[#allocation4 + $0x70] sm:$0xff] (!%p1987_p10), %vm555_vm1, %v2544_v1  ;;  %571 = vst.msk [vmem:[#allocation4 + $0x78] sm:$0xff] (!%p1987_p10), %vm555_vm1, %v2544_v1 }
  0x4a PF: > { %p1988_p11 = scmp.ge.s32.totalorder %s2515_s1, %s2671_s0 }
  0x4c   : > { %575 = sbr.rel (%p1988_p11) target bundleno = 900 (0x384), region = 48 }
  0x53   : > { %v592_v2 = vld [vmem:[%s2683_s22] sm:$0xff]  ;;  %v593_v3 = vld [vmem:[%s2683_s22 + $0x8] sm:$0xff]  ;;  %vm3475_vm2 = vcmask 523264   ;;  %v594_v4 = vld [vmem:[%s2683_s22 + $0x10] sm:$0xff]  ;;  %v2545_v8 = vmov 0  }
  0x54   : > { %v2217_v5 = vpack.c.bf16 %v593_v3, %v592_v2  ;;  %vm2747_vm3 = vmpackc.low %vm3475_vm2, %vm3475_vm2  ;;  %v595_v7 = vld [vmem:[%s2683_s22 + $0x18] sm:$0xff]  ;;  %2359 = vset.pattern.permute.xlu0 %v2545_v8  ;;  %2360 = vset.pattern.permute.xlu1 %v2545_v8  ;;  %v576_v10 = vld [vmem:[%s2656_s18] sm:$0xff] }
  0x55   : > { %v2223_v9 = vpack.c.bf16 %v595_v7, %v594_v4  ;;  %v596_v11 = vld [vmem:[%s2683_s22 + $0x20] sm:$0xff]  ;;  %v597_v12 = vld [vmem:[%s2683_s22 + $0x28] sm:$0xff]  ;;  %v624_v13 = vmul.f32 0.125, %v576_v10  ;;  %v884_v16 = vld [vmem:[%s2647_s27 + $0x10] sm:$0xff] }
  0x56   : > { %2219 = vmatprep.subr.msk.bf16.mxu0 %vm2747_vm3, %v2217_v5  ;;  %v2229_v14 = vpack.c.bf16 %v597_v12, %v596_v11  ;;  %v882_v15 = vld [vmem:[%s2647_s27] sm:$0xff]  ;;  %906 = vperm.xlu1 %2360, %v884_v16   ;;  %v883_v17 = vld [vmem:[%s2647_s27 + $0x8] sm:$0xff]  ;;  %v598_v18 = vld [vmem:[%s2683_s22 + $0x30] sm:$0xff] }
  0x57   : > { %2222 = vmatpush3.bf16.xpose.msk.msra.mxu0 %vm2747_vm3, %v2217_v5  ;;  %2137 = vmatprep.mubr.msk.f32.mxu0 %vm3475_vm2, %v624_v13  ;;  %v599_v19 = vld [vmem:[%s2683_s22 + $0x38] sm:$0xff]  ;;  %v886_v22 = vld [vmem:[%s2647_s27 + $0x20] sm:$0xff]  ;;  %v887_v23 = vld [vmem:[%s2647_s27 + $0x28] sm:$0xff] }
  0x58   : > { %2225 = vmatprep.subr.msk.bf16.mxu0 %vm2747_vm3, %v2223_v9  ;;  %900 = vperm.xlu0 %2359, %v882_v15   ;;  %v885_v20 = vld [vmem:[%s2647_s27 + $0x18] sm:$0xff]  ;;  %v2235_v21 = vpack.c.bf16 %v599_v19, %v598_v18  ;;  %v888_v24 = vld [vmem:[%s2647_s27 + $0x30] sm:$0xff]  ;;  %v600_v25 = vld [vmem:[%s2683_s22 + $0x40] sm:$0xff] }
  0x59   : > { %v601_v26 = vld [vmem:[%s2683_s22 + $0x48] sm:$0xff]  ;;  %v889_v27 = vld [vmem:[%s2647_s27 + $0x38] sm:$0xff]  ;;  %v890_v29 = vld [vmem:[%s2647_s27 + $0x40] sm:$0xff] }
  0x5a   : > { %909 = vperm.xlu1 %2360, %v885_v20   ;;  %v2241_v28 = vpack.c.bf16 %v601_v26, %v600_v25  ;;  %v891_v30 = vld [vmem:[%s2647_s27 + $0x48] sm:$0xff]  ;;  %v892_v31 = vld [vmem:[%s2647_s27 + $0x50] sm:$0xff]  ;;  %v603_v33 = vld [vmem:[%s2683_s22 + $0x58] sm:$0xff] }
  0x5b   : > { %v602_v32 = vld [vmem:[%s2683_s22 + $0x50] sm:$0xff]  ;;  %v893_v34 = vld [vmem:[%s2647_s27 + $0x58] sm:$0xff]  ;;  %v894_v36 = vld [vmem:[%s2647_s27 + $0x60] sm:$0xff] }
  0x5c   : > { %903 = vperm.xlu0 %2359, %v883_v17   ;;  %v2247_v35 = vpack.c.bf16 %v603_v33, %v602_v32  ;;  %v895_v37 = vld [vmem:[%s2647_s27 + $0x68] sm:$0xff]  ;;  %v896_v38 = vld [vmem:[%s2647_s27 + $0x70] sm:$0xff]  ;;  %v604_v39 = vld [vmem:[%s2683_s22 + $0x60] sm:$0xff] }
  0x5d   : > { %v605_v40 = vld [vmem:[%s2683_s22 + $0x68] sm:$0xff]  ;;  %v897_v41 = vld [vmem:[%s2647_s27 + $0x78] sm:$0xff]  ;;  %v606_v43 = vld [vmem:[%s2683_s22 + $0x70] sm:$0xff] }
  0x5e   : > { %915 = vperm.xlu1 %2360, %v887_v23   ;;  %v2253_v42 = vpack.c.bf16 %v605_v40, %v604_v39  ;;  %v607_v44 = vld [vmem:[%s2683_s22 + $0x78] sm:$0xff]  ;;  %v577_v46 = vld [vmem:[%s2656_s18 + $0x8] sm:$0xff]  ;;  %v578_v47 = vld [vmem:[%s2656_s18 + $0x10] sm:$0xff] }
  0x5f   : > { %2228 = vmatpush3.bf16.xpose.msk.msra.mxu0 %vm2747_vm3, %v2223_v9  ;;  %v2259_v45 = vpack.c.bf16 %v607_v44, %v606_v43  ;;  %v625_v48 = vmul.f32 0.125, %v577_v46  ;;  %v626_v49 = vmul.f32 0.125, %v578_v47  ;;  %v579_v50 = vld [vmem:[%s2656_s18 + $0x18] sm:$0xff]  ;;  %v580_v51 = vld [vmem:[%s2656_s18 + $0x20] sm:$0xff]  ;;  %v581_v54 = vld [vmem:[%s2656_s18 + $0x28] sm:$0xff] }
  0x60   : > { %2231 = vmatprep.subr.msk.bf16.mxu0 %vm2747_vm3, %v2229_v14  ;;  %912 = vperm.xlu0 %2359, %v886_v22   ;;  %v627_v52 = vmul.f32 0.125, %v579_v50  ;;  %v628_v53 = vmul.f32 0.125, %v580_v51  ;;  %v582_v55 = vld [vmem:[%s2656_s18 + $0x30] sm:$0xff]  ;;  %v629_v56 = vmul.f32 0.125, %v581_v54  ;;  %v583_v58 = vld [vmem:[%s2656_s18 + $0x38] sm:$0xff]  ;;  %v584_v59 = vld [vmem:[%s2656_s18 + $0x40] sm:$0xff] }
  0x61   : > { %v630_v57 = vmul.f32 0.125, %v582_v55  ;;  %v631_v60 = vmul.f32 0.125, %v583_v58  ;;  %v632_v61 = vmul.f32 0.125, %v584_v59  ;;  %v585_v62 = vld [vmem:[%s2656_s18 + $0x48] sm:$0xff]  ;;  %v586_v63 = vld [vmem:[%s2656_s18 + $0x50] sm:$0xff]  ;;  %v587_v2 = vld [vmem:[%s2656_s18 + $0x58] sm:$0xff] }
  0x62   : > { %921 = vperm.xlu1 %2360, %v889_v27   ;;  %v633_v0 = vmul.f32 0.125, %v585_v62  ;;  %v634_v1 = vmul.f32 0.125, %v586_v63  ;;  %v588_v3 = vld [vmem:[%s2656_s18 + $0x60] sm:$0xff]  ;;  %v635_v4 = vmul.f32 0.125, %v587_v2  ;;  %v589_v6 = vld [vmem:[%s2656_s18 + $0x68] sm:$0xff]  ;;  %v590_v7 = vld [vmem:[%s2656_s18 + $0x70] sm:$0xff] }
  0x63   : > { %v636_v5 = vmul.f32 0.125, %v588_v3  ;;  %v637_v8 = vmul.f32 0.125, %v589_v6  ;;  %v638_v9 = vmul.f32 0.125, %v590_v7  ;;  %v591_v10 = vld [vmem:[%s2656_s18 + $0x78] sm:$0xff]  ;;  %v2857_v16 = vld [vmem:[%s446_s2] ss:$0 sm:$0xff] }
  0x64   : > { %918 = vperm.xlu0 %2359, %v888_v24   ;;  %v639_v11 = vmul.f32 0.125, %v591_v10  ;;  %v609_v62 = vld [vmem:[%s2689_s23 + $0x8] sm:$0xff]  ;;  %v610_v63 = vld [vmem:[%s2689_s23 + $0x10] sm:$0xff]  ;;  %v612_v3 = vld [vmem:[%s2689_s23 + $0x20] sm:$0xff] }
  0x65   : > { %v614_v6 = vld [vmem:[%s2689_s23 + $0x30] sm:$0xff]  ;;  %v615_v7 = vld [vmem:[%s2689_s23 + $0x38] sm:$0xff]  ;;  %v3021_v10 = vld [vmem:[#allocation2] sm:$0xff] }
  0x66   : > { %927 = vperm.xlu1 %2360, %v891_v30  }
  0x67   : > { %2234 = vmatpush3.bf16.xpose.msk.msra.mxu0 %vm2747_vm3, %v2229_v14 }
  0x68   : > { %2237 = vmatprep.subr.msk.bf16.mxu0 %vm2747_vm3, %v2235_v21  ;;  %924 = vperm.xlu0 %2359, %v890_v29  }
  0x6a   : > { %933 = vperm.xlu1 %2360, %v893_v34  }
  0x6c   : > { %930 = vperm.xlu0 %2359, %v892_v31  }
  0x6e   : > { %939 = vperm.xlu1 %2360, %v895_v37  }
  0x6f   : > { %2240 = vmatpush3.bf16.xpose.msk.msra.mxu0 %vm2747_vm3, %v2235_v21 }
  0x70   : > { %2243 = vmatprep.subr.msk.bf16.mxu0 %vm2747_vm3, %v2241_v28  ;;  %936 = vperm.xlu0 %2359, %v894_v36  }
  0x72   : > { %945 = vperm.xlu1 %2360, %v897_v41  }
  0x74   : > { %942 = vperm.xlu0 %2359, %v896_v38  }
  0x77   : > { %2246 = vmatpush3.bf16.xpose.msk.msra.mxu0 %vm2747_vm3, %v2241_v28 }
  0x78   : > { %2249 = vmatprep.subr.msk.bf16.mxu0 %vm2747_vm3, %v2247_v35 }
  0x7f   : > { %2252 = vmatpush3.bf16.xpose.msk.msra.mxu0 %vm2747_vm3, %v2247_v35 }
  0x80   : > { %2255 = vmatprep.subr.msk.bf16.mxu0 %vm2747_vm3, %v2253_v42 }
  0x87   : > { %2258 = vmatpush3.bf16.xpose.msk.msra.mxu0 %vm2747_vm3, %v2253_v42 }
  0x88   : > { %2261 = vmatprep.subr.msk.bf16.mxu0 %vm2747_vm3, %v2259_v45 }
  0x8f   : > { %2264 = vmatpush3.bf16.xpose.msk.msra.mxu0 %vm2747_vm3, %v2259_v45 }
  0x96   : > { %2138 = vmatmul.mubr.msk.f32.vlgmr.msra.gmra.mrb[0].mxu0 %vm3475_vm2, %v625_v48 }
  0x97   : > { %2140 = vmatprep.mubr.msk.f32.mxu0 %vm3475_vm2, %v626_v49 }
  0x9a   : > { %2141 = vmatmul.mubr.msk.f32.gmra.mrb[2].mxu0 %vm3475_vm2, %v627_v52 }
  0x9b   : > { %2143 = vmatprep.mubr.msk.f32.mxu0 %vm3475_vm2, %v628_v53 }
  0x9e   : > { %2144 = vmatmul.mubr.msk.f32.gmra.mrb[4].mxu0 %vm3475_vm2, %v629_v56 }
  0x9f   : > { %2146 = vmatprep.mubr.msk.f32.mxu0 %vm3475_vm2, %v630_v57 }
  0xa2   : > { %2147 = vmatmul.mubr.msk.f32.gmra.mrb[6].mxu0 %vm3475_vm2, %v631_v60 }
  0xa3   : > { %2149 = vmatprep.mubr.msk.f32.mxu0 %vm3475_vm2, %v632_v61  ;;  %v608_v61 = vld [vmem:[%s2689_s23] sm:$0xff] }
  0xa6   : > { %2150 = vmatmul.mubr.msk.f32.gmra.mrb[8].mxu0 %vm3475_vm2, %v633_v0  ;;  %v2265_v0 = vpack.c.bf16 %v609_v62, %v608_v61 }
  0xa7   : > { %2152 = vmatprep.mubr.msk.f32.mxu0 %vm3475_vm2, %v634_v1  ;;  %v611_v1 = vld [vmem:[%s2689_s23 + $0x18] sm:$0xff] }
  0xa8   : > { %v2269_v2 = vpack.c.bf16 %v611_v1, %v610_v63  ;;  %2266 = vmatprep.subr.bf16.mxu1 %v2265_v0  ;;  %v620_v63 = vld [vmem:[%s2689_s23 + $0x60] sm:$0xff]  ;;  %v3057_v1 = vld [vmem:[#allocation2 + $0x28] sm:$0xff] }
  0xa9   : > { %2268 = vmatpush3.bf16.msra.mxu1 %v2265_v0  ;;  %v621_v0 = vld [vmem:[%s2689_s23 + $0x68] sm:$0xff] }
  0xaa   : > { %2153 = vmatmul.mubr.msk.f32.gmra.mrb[10].mxu0 %vm3475_vm2, %v635_v4  ;;  %v613_v4 = vld [vmem:[%s2689_s23 + $0x28] sm:$0xff]  ;;  %2270 = vmatprep.subr.bf16.mxu1 %v2269_v2 }
  0xab   : > { %2155 = vmatprep.mubr.msk.f32.mxu0 %vm3475_vm2, %v636_v5  ;;  %v2273_v5 = vpack.c.bf16 %v613_v4, %v612_v3  ;;  %v2289_v3 = vpack.c.bf16 %v621_v0, %v620_v63 }
  0xad   : > { %2272 = vmatpush3.bf16.msra.mxu1 %v2269_v2  ;;  %v3059_v2 = vld [vmem:[#allocation2 + $0x30] sm:$0xff] }
  0xae   : > { %2156 = vmatmul.mubr.msk.f32.gmra.mrb[12].mxu0 %vm3475_vm2, %v637_v8  ;;  %2274 = vmatprep.subr.bf16.mxu1 %v2273_v5  ;;  %v2277_v8 = vpack.c.bf16 %v615_v7, %v614_v6 }
  0xaf   : > { %2158 = vmatprep.mubr.msk.f32.mxu0 %vm3475_vm2, %v638_v9  ;;  %v3019_v9 = vld [vmem:[#allocation2 + $0x8] sm:$0xff] }
  0xb1   : > { %2276 = vmatpush3.bf16.msra.mxu1 %v2273_v5 }
  0xb2   : > { %2159 = vmatmul.mubr.msk.f32.gmra.mrb[14].mxu0 %vm3475_vm2, %v639_v11  ;;  %2278 = vmatprep.subr.bf16.mxu1 %v2277_v8 }
  0xb5   : > { %2280 = vmatpush3.bf16.msra.mxu1 %v2277_v8  ;;  %v622_v8 = vld [vmem:[%s2689_s23 + $0x70] sm:$0xff] }
  0xd5   : > { %v2846_v13 = vpop.permute.xlu1 %906 }
  0xd6   : > { %vm953_vm6 = vcmp.eq.s32.totalorder %v2846_v13, %v2857_v16 }
  0xd7   : > { %v2844_v12 = vpop.permute.xlu0 %900 }
  0xd8   : > { %vm951_vm5 = vcmp.eq.s32.totalorder %v2844_v12, %v2857_v16 }
  0xd9   : > { %v2850_v15 = vpop.permute.xlu1 %909 }
  0xda   : > { %vm954_vm7 = vcmp.eq.s32.totalorder %v2850_v15, %v2857_v16 }
  0xdb   : > { %v2848_v14 = vpop.permute.xlu0 %903 }
  0xdc   : > { %vm952_vm4 = vcmp.eq.s32.totalorder %v2848_v14, %v2857_v16 }
  0xdd   : > { %v2865_v18 = vpop.permute.xlu1 %915 }
  0xde   : > { %vm956_vm9 = vcmp.eq.s32.totalorder %v2865_v18, %v2857_v16 }
  0xdf   : > { %v2859_v17 = vpop.permute.xlu0 %912 }
  0xe0   : > { %vm955_vm8 = vcmp.eq.s32.totalorder %v2859_v17, %v2857_v16 }
  0xe1   : > { %v2883_v26 = vpop.permute.xlu1 %921 }
  0xe2   : > { %vm958_vm11 = vcmp.eq.s32.totalorder %v2883_v26, %v2857_v16 }
  0xe3   : > { %v2872_v22 = vpop.permute.xlu0 %918 }
  0xe4   : > { %vm957_vm10 = vcmp.eq.s32.totalorder %v2872_v22, %v2857_v16 }
  0xe5   : > { %v2909_v33 = vpop.permute.xlu1 %927 }
  0xe6   : > { %vm960_vm13 = vcmp.eq.s32.totalorder %v2909_v33, %v2857_v16 }
  0xe7   : > { %v2893_v28 = vpop.permute.xlu0 %924 }
  0xe8   : > { %vm959_vm12 = vcmp.eq.s32.totalorder %v2893_v28, %v2857_v16 }
  0xe9   : > { %v2933_v41 = vpop.permute.xlu1 %933 }
  0xea   : > { %vm962_vm15 = vcmp.eq.s32.totalorder %v2933_v41, %v2857_v16 }
  0xeb   : > { %v2915_v36 = vpop.permute.xlu0 %930 }
  0xec   : > { %vm961_vm14 = vcmp.eq.s32.totalorder %v2915_v36, %v2857_v16 }
  0xed   : > { %v2965_v49 = vpop.permute.xlu1 %939 }
  0xee   : > { %vm964_vm1 = vcmp.eq.s32.totalorder %v2965_v49, %v2857_v16 }
  0xef   : > { %v2947_v44 = vpop.permute.xlu0 %936 }
  0xf0   : > { %vm963_vm0 = vcmp.eq.s32.totalorder %v2947_v44, %v2857_v16 }
  0xf1   : > { %v2989_v57 = vpop.permute.xlu1 %945 }
  0xf2   : > { %vm3476_vm2 = vcmp.eq.s32.totalorder %v2989_v57, %v2857_v16 }
  0xf3   : > { %v2971_v52 = vpop.permute.xlu0 %942 }
  0xf4   : > { %vm965_vm3 = vcmp.eq.s32.totalorder %v2971_v52, %v2857_v16 }
 0x169   : > { %v2139_v19 = vpop.f32.mrb[0].mxu0 }
 0x16a   : > { %v803_v20 = vpop.f32.mrb[1].mxu0  ;;  %v2870_v21 = vsel %vm952_vm4, %v2139_v19, -1e+30 }
 0x16b   : > { %1001 = vmax.xlane.f32.xlu1 %v2870_v21  ;;  %v2878_v23 = vsel %vm951_vm5, %v803_v20, -1e+30 }
 0x16c   : > { %999 = vmax.xlane.f32.xlu0 %v2878_v23 }
 0x16d   : > { %v2142_v24 = vpop.f32.mrb[2].mxu0 }
 0x16e   : > { %v813_v25 = vpop.f32.mrb[3].mxu0  ;;  %v2900_v31 = vsel %vm954_vm7, %v2142_v24, -1e+30 }
 0x16f   : > { %v2888_v27 = vsel %vm953_vm6, %v813_v25, -1e+30  ;;  %v616_v25 = vld [vmem:[%s2689_s23 + $0x40] sm:$0xff] }
 0x170   : > { %1003 = vmax.xlane.f32.xlu0 %v2888_v27 }
 0x171   : > { %v2145_v29 = vpop.f32.mrb[4].mxu0 }
 0x172   : > { %v823_v30 = vpop.f32.mrb[5].mxu0  ;;  %v2920_v37 = vsel %vm956_vm9, %v2145_v29, -1e+30  ;;  %v617_v29 = vld [vmem:[%s2689_s23 + $0x48] sm:$0xff] }
 0x173   : > { %v2905_v32 = vsel %vm955_vm8, %v823_v30, -1e+30  ;;  %v3034_v30 = vld [vmem:[#allocation2 + $0x10] sm:$0xff] }
 0x174   : > { %1005 = vmax.xlane.f32.xlu0 %v2900_v31  ;;  %1007 = vmax.xlane.f32.xlu1 %v2905_v32 }
 0x175   : > { %v2148_v34 = vpop.f32.mrb[6].mxu0 }
 0x176   : > { %v833_v35 = vpop.f32.mrb[7].mxu0  ;;  %v2938_v42 = vsel %vm958_vm11, %v2148_v34, -1e+30  ;;  %v2281_v34 = vpack.c.bf16 %v617_v29, %v616_v25  ;;  %v3073_v25 = vld [vmem:[#allocation2 + $0x40] sm:$0xff] }
 0x177   : > { %v2925_v38 = vsel %vm957_vm10, %v833_v35, -1e+30 }
 0x178   : > { %1009 = vmax.xlane.f32.xlu0 %v2920_v37  ;;  %1011 = vmax.xlane.f32.xlu1 %v2925_v38 }
 0x179   : > { %v2151_v39 = vpop.f32.mrb[8].mxu0  ;;  %2282 = vmatprep.subr.bf16.mxu1 %v2281_v34 }
 0x17a   : > { %v843_v40 = vpop.f32.mrb[9].mxu0  ;;  %v2956_v47 = vsel %vm960_vm13, %v2151_v39, -1e+30  ;;  %2284 = vmatpush3.bf16.msra.mxu1 %v2281_v34 }
 0x17b   : > { %v2943_v43 = vsel %vm959_vm12, %v843_v40, -1e+30  ;;  %v618_v40 = vld [vmem:[%s2689_s23 + $0x50] sm:$0xff] }
 0x17c   : > { %1013 = vmax.xlane.f32.xlu0 %v2938_v42  ;;  %1015 = vmax.xlane.f32.xlu1 %v2943_v43 }
 0x17d   : > { %v2154_v45 = vpop.f32.mrb[10].mxu0 }
 0x17e   : > { %v853_v46 = vpop.f32.mrb[11].mxu0  ;;  %v2976_v53 = vsel %vm962_vm15, %v2154_v45, -1e+30  ;;  %v619_v45 = vld [vmem:[%s2689_s23 + $0x58] sm:$0xff] }
 0x17f   : > { %v2961_v48 = vsel %vm961_vm14, %v853_v46, -1e+30  ;;  %v3044_v46 = vld [vmem:[#allocation2 + $0x18] sm:$0xff] }
 0x180   : > { %1017 = vmax.xlane.f32.xlu0 %v2956_v47  ;;  %1019 = vmax.xlane.f32.xlu1 %v2961_v48 }
 0x181   : > { %v2157_v50 = vpop.f32.mrb[12].mxu0 }
 0x182   : > { %v863_v51 = vpop.f32.mrb[13].mxu0  ;;  %v2994_v58 = vsel %vm964_vm1, %v2157_v50, -1e+30  ;;  %v3046_v50 = vld [vmem:[#allocation2 + $0x20] sm:$0xff] }
 0x183   : > { %v2981_v54 = vsel %vm963_vm0, %v863_v51, -1e+30  ;;  %v2285_v51 = vpack.c.bf16 %v619_v45, %v618_v40 }
 0x184   : > { %1021 = vmax.xlane.f32.xlu0 %v2976_v53  ;;  %1023 = vmax.xlane.f32.xlu1 %v2981_v54 }
 0x185   : > { %v2160_v55 = vpop.f32.mrb[14].mxu0  ;;  %2286 = vmatprep.subr.bf16.mxu1 %v2285_v51 }
 0x186   : > { %v873_v56 = vpop.f32.mrb[15].mxu0  ;;  %v3008_v60 = vsel %vm3476_vm2, %v2160_v55, -1e+30  ;;  %vm1319_vm2 = vcmask 7168   ;;  %2288 = vmatpush3.bf16.msra.mxu1 %v2285_v51 }
 0x187   : > { %v2999_v59 = vsel %vm965_vm3, %v873_v56, -1e+30  ;;  %2290 = vmatprep.subr.bf16.mxu1 %v2289_v3 }
 0x188   : > { %1025 = vmax.xlane.f32.xlu0 %v2994_v58  ;;  %1027 = vmax.xlane.f32.xlu1 %v2999_v59 }
 0x18a   : > { %2292 = vmatpush3.bf16.msra.mxu1 %v2289_v3 }
 0x18c   : > { %1029 = vmax.xlane.f32.xlu0 %v3008_v60 }
 0x1f8   : > { %v1002_v11 = vpop.xlane.xlu1 %1001 }
 0x1f9   : > { %v3024_v19 = vmax.f32 %v3019_v9, %v1002_v11  ;;  %v1000_v20 = vpop.xlane.xlu0 %999  ;;  %v623_v11 = vld [vmem:[%s2689_s23 + $0x78] sm:$0xff] }
 0x1fa   : > { %v3027_v24 = vmax.f32 %v3021_v10, %v1000_v20  ;;  %v3071_v20 = vld [vmem:[#allocation2 + $0x38] sm:$0xff]  ;;  %v2293_v29 = vpack.c.bf16 %v623_v11, %v622_v8 }
 0x1fb   : > { %1626 = vst.msk [vmem:[#allocation2 + $0x8] sm:$0xff] %vm1319_vm2, %v3024_v19  ;;  %1102 = vperm.xlu0 %2359, %v3024_v19   ;;  %v1048_v34 = vsub.f32 %v3019_v9, %v3024_v19  ;;  %v3100_v8 = vld [vmem:[#allocation2 + $0x58] sm:$0xff] }
 0x1fc   : > { %1625 = vst.msk [vmem:[#allocation2] sm:$0xff] %vm1319_vm2, %v3027_v24  ;;  %1097 = vperm.xlu1 %2360, %v3027_v24   ;;  %2294 = vmatprep.subr.bf16.mxu1 %v2293_v29  ;;  %v1047_v63 = vsub.f32 %v3021_v10, %v3027_v24  ;;  %v3102_v10 = vld [vmem:[#allocation2 + $0x60] sm:$0xff] }
 0x1fd   : > { %v1004_v35 = vpop.xlane.xlu0 %1003  ;;  %2296 = vmatpush3.bf16.msra.mxu1 %v2293_v29  ;;  %v1065_v9 = vmul.f32 1.442695, %v1048_v34 }
 0x1fe   : > { %v3040_v39 = vmax.f32 %v3034_v30, %v1004_v35  ;;  %v1063_v24 = vmul.f32 1.442695, %v1047_v63 }
 0x1ff   : > { %2361 = vpow2.f32 %v1065_v9 }
 0x200   : > { %1627 = vst.msk [vmem:[#allocation2 + $0x10] sm:$0xff] %vm1319_vm2, %v3040_v39  ;;  %1107 = vperm.xlu1 %2360, %v3040_v39   ;;  %v1049_v11 = vsub.f32 %v3034_v30, %v3040_v39  ;;  %v3115_v30 = vld [vmem:[#allocation2 + $0x68] sm:$0xff]  ;;  %v3117_v39 = vld [vmem:[#allocation2 + $0x70] sm:$0xff]  ;;  %2363 = vpow2.f32 %v1063_v24 }
 0x201   : > { %v1006_v55 = vpop.xlane.xlu0 %1005  ;;  %v1008_v56 = vpop.xlane.xlu1 %1007 }
 0x202   : > { %v3052_v61 = vmax.f32 %v3044_v46, %v1006_v55  ;;  %v1035_v62 = vmax.f32 %v3046_v50, %v1008_v56  ;;  %v3085_v55 = vld [vmem:[#allocation2 + $0x48] sm:$0xff]  ;;  %v3087_v56 = vld [vmem:[#allocation2 + $0x50] sm:$0xff]  ;;  %v1067_v63 = vmul.f32 1.442695, %v1049_v11 }
 0x204   : > { %1628 = vst.msk [vmem:[#allocation2 + $0x18] sm:$0xff] %vm1319_vm2, %v3052_v61  ;;  %1629 = vst.msk [vmem:[#allocation2 + $0x20] sm:$0xff] %vm1319_vm2, %v1035_v62  ;;  %1117 = vperm.xlu0 %2359, %v1035_v62   ;;  %1112 = vperm.xlu1 %2360, %v3052_v61   ;;  %v1051_v19 = vsub.f32 %v3046_v50, %v1035_v62 }
 0x205   : > { %v1010_v4 = vpop.xlane.xlu0 %1009  ;;  %v1012_v5 = vpop.xlane.xlu1 %1011 }
 0x206   : > { %v3066_v6 = vmax.f32 %v3057_v1, %v1010_v4  ;;  %v1037_v7 = vmax.f32 %v3059_v2, %v1012_v5  ;;  %v1071_v50 = vmul.f32 1.442695, %v1051_v19 }
 0x208   : > { %1630 = vst.msk [vmem:[#allocation2 + $0x28] sm:$0xff] %vm1319_vm2, %v3066_v6  ;;  %1631 = vst.msk [vmem:[#allocation2 + $0x30] sm:$0xff] %vm1319_vm2, %v1037_v7  ;;  %1127 = vperm.xlu0 %2359, %v1037_v7   ;;  %1122 = vperm.xlu1 %2360, %v3066_v6   ;;  %v1053_v62 = vsub.f32 %v3059_v2, %v1037_v7  ;;  %2365 = vpow2.f32 %v1071_v50  ;;  %v1052_v11 = vsub.f32 %v3057_v1, %v3066_v6 }
 0x209   : > { %v1014_v35 = vpop.xlane.xlu0 %1013  ;;  %v1016_v40 = vpop.xlane.xlu1 %1015  ;;  %2367 = vpow2.f32 %v1067_v63 }
 0x20a   : > { %v3082_v45 = vmax.f32 %v3071_v20, %v1014_v35  ;;  %v1039_v51 = vmax.f32 %v3073_v25, %v1016_v40  ;;  %v1075_v2 = vmul.f32 1.442695, %v1053_v62  ;;  %v3144_v1 = vpop.eup %2361  ;;  %v1073_v6 = vmul.f32 1.442695, %v1052_v11 }
 0x20c   : > { %1632 = vst.msk [vmem:[#allocation2 + $0x38] sm:$0xff] %vm1319_vm2, %v3082_v45  ;;  %1633 = vst.msk [vmem:[#allocation2 + $0x40] sm:$0xff] %vm1319_vm2, %v1039_v51  ;;  %1137 = vperm.xlu0 %2359, %v1039_v51   ;;  %1132 = vperm.xlu1 %2360, %v3082_v45   ;;  %v1055_v7 = vsub.f32 %v3073_v25, %v1039_v51  ;;  %2369 = vpow2.f32 %v1075_v2 }
 0x20d   : > { %v1018_v0 = vpop.xlane.xlu0 %1017  ;;  %v1020_v3 = vpop.xlane.xlu1 %1019 }
 0x20e   : > { %v3097_v4 = vmax.f32 %v3085_v55, %v1018_v0  ;;  %v1041_v5 = vmax.f32 %v3087_v56, %v1020_v3  ;;  %v1050_v0 = vsub.f32 %v3044_v46, %v3052_v61  ;;  %v3130_v46 = vld [vmem:[#allocation2 + $0x78] sm:$0xff]  ;;  %v1079_v25 = vmul.f32 1.442695, %v1055_v7 }
 0x210   : > { %1634 = vst.msk [vmem:[#allocation2 + $0x48] sm:$0xff] %vm1319_vm2, %v3097_v4  ;;  %1635 = vst.msk [vmem:[#allocation2 + $0x50] sm:$0xff] %vm1319_vm2, %v1041_v5  ;;  %1147 = vperm.xlu0 %2359, %v1041_v5   ;;  %1142 = vperm.xlu1 %2360, %v3097_v4   ;;  %v1069_v61 = vmul.f32 1.442695, %v1050_v0  ;;  %v1057_v51 = vsub.f32 %v3087_v56, %v1041_v5  ;;  %v3155_v0 = vpop.eup %2363 }
 0x211   : > { %v1022_v29 = vpop.xlane.xlu0 %1021  ;;  %v1024_v34 = vpop.xlane.xlu1 %1023 }
 0x212   : > { %v3112_v35 = vmax.f32 %v3100_v8, %v1022_v29  ;;  %v1043_v40 = vmax.f32 %v3102_v10, %v1024_v34  ;;  %2371 = vpow2.f32 %v1069_v61  ;;  %v1054_v34 = vsub.f32 %v3071_v20, %v3082_v45  ;;  %v3157_v2 = vpop.eup %2365 }
 0x213   : > { %2373 = vpow2.f32 %v1079_v25  ;;  %v1083_v56 = vmul.f32 1.442695, %v1057_v51  ;;  %v1056_v45 = vsub.f32 %v3085_v55, %v3097_v4 }
 0x214   : > { %1636 = vst.msk [vmem:[#allocation2 + $0x58] sm:$0xff] %vm1319_vm2, %v3112_v35  ;;  %1637 = vst.msk [vmem:[#allocation2 + $0x60] sm:$0xff] %vm1319_vm2, %v1043_v40  ;;  %1157 = vperm.xlu0 %2359, %v1043_v40   ;;  %1152 = vperm.xlu1 %2360, %v3112_v35   ;;  %v1059_v5 = vsub.f32 %v3102_v10, %v1043_v40  ;;  %2375 = vpow2.f32 %v1073_v6  ;;  %v1077_v20 = vmul.f32 1.442695, %v1054_v34 }
 0x215   : > { %v1026_v9 = vpop.xlane.xlu0 %1025  ;;  %v1028_v19 = vpop.xlane.xlu1 %1027  ;;  %2377 = vpow2.f32 %v1083_v56  ;;  %v1081_v10 = vmul.f32 1.442695, %v1056_v45  ;;  %v1058_v40 = vsub.f32 %v3100_v8, %v3112_v35 }
 0x216   : > { %v1044_v3 = vmax.f32 %v3115_v30, %v1026_v9  ;;  %v3128_v24 = vmax.f32 %v3117_v39, %v1028_v19  ;;  %v1087_v7 = vmul.f32 1.442695, %v1059_v5  ;;  %v3163_v9 = vpop.eup %2367  ;;  %2379 = vpow2.f32 %v1077_v20 }
 0x217   : > { %v3165_v19 = vpop.eup %2369  ;;  %v1085_v55 = vmul.f32 1.442695, %v1058_v40 }
 0x218   : > { %1638 = vst.msk [vmem:[#allocation2 + $0x68] sm:$0xff] %vm1319_vm2, %v1044_v3  ;;  %1639 = vst.msk [vmem:[#allocation2 + $0x70] sm:$0xff] %vm1319_vm2, %v3128_v24  ;;  %1162 = vperm.xlu1 %2360, %v1044_v3   ;;  %1167 = vperm.xlu0 %2359, %v3128_v24   ;;  %2381 = vpow2.f32 %v1087_v7  ;;  %v1060_v4 = vsub.f32 %v3115_v30, %v1044_v3 }
 0x219   : > { %v1030_v62 = vpop.xlane.xlu0 %1029  ;;  %2383 = vpow2.f32 %v1081_v10 }
 0x21a   : > { %v3142_v29 = vmax.f32 %v3130_v46, %v1030_v62  ;;  %2385 = vpow2.f32 %v1085_v55  ;;  %v1089_v8 = vmul.f32 1.442695, %v1060_v4 }
 0x21c   : > { %1640 = vst.msk [vmem:[#allocation2 + $0x78] sm:$0xff] %vm1319_vm2, %v3142_v29  ;;  %1172 = vperm.xlu1 %2360, %v3142_v29   ;;  %1359 = vperm.xlu0 %2359, %v3144_v1   ;;  %v3171_v61 = vpop.eup %2371  ;;  %2387 = vpow2.f32 %v1089_v8 }
 0x21d   : > { %v3173_v11 = vpop.eup %2373 }
 0x21e   : > { %v3178_v25 = vpop.eup %2375 }
 0x21f   : > { %v3180_v51 = vpop.eup %2377 }
 0x220   : > { %1354 = vperm.xlu1 %2360, %v3155_v0   ;;  %1374 = vperm.xlu0 %2359, %v3157_v2   ;;  %v3184_v35 = vpop.eup %2379 }
 0x222   : > { %v3186_v62 = vpop.eup %2381 }
 0x223   : > { %v3190_v30 = vpop.eup %2383 }
 0x224   : > { %1364 = vperm.xlu1 %2360, %v3163_v9   ;;  %1384 = vperm.xlu0 %2359, %v3165_v19   ;;  %v3193_v3 = vpop.eup %2385 }
 0x225   : > { %3490 = vst [vmem:[#allocation12_spill] sm:$0xff] %v3193_v3 }
 0x226   : > { %v3196_v6 = vpop.eup %2387 }
 0x227   : > { %3491 = vst [vmem:[#allocation13_spill] sm:$0xff] %v3196_v6 }
 0x228   : > { %1369 = vperm.xlu1 %2360, %v3171_v61   ;;  %1394 = vperm.xlu0 %2359, %v3173_v11  }
 0x22c   : > { %1379 = vperm.xlu1 %2360, %v3178_v25   ;;  %1404 = vperm.xlu0 %2359, %v3180_v51  }
 0x230   : > { %1389 = vperm.xlu1 %2360, %v3184_v35   ;;  %1414 = vperm.xlu0 %2359, %v3186_v62  }
 0x234   : > { %1399 = vperm.xlu1 %2360, %v3190_v30  }
 0x238   : > { %1409 = vperm.xlu1 %2360, %v3193_v3  }
 0x23c   : > { %1419 = vperm.xlu1 %2360, %v3196_v6  }
 0x27a   : > { %v1103_v34 = vpop.permute.xlu0 %1102 }
 0x27b   : > { %v1176_v56 = vsub.f32 %v2870_v21, %v1103_v34  ;;  %v1098_v5 = vpop.permute.xlu1 %1097 }
 0x27c   : > { %v1175_v20 = vsub.f32 %v2878_v23, %v1098_v5 }
 0x27d   : > { %v1193_v45 = vmul.f32 1.442695, %v1176_v56 }
 0x27e   : > { %v1191_v7 = vmul.f32 1.442695, %v1175_v20 }
 0x27f   : > { %2389 = vpow2.f32 %v1193_v45  ;;  %v1108_v10 = vpop.permute.xlu1 %1107 }
 0x280   : > { %2391 = vpow2.f32 %v1191_v7  ;;  %v1177_v40 = vsub.f32 %v2888_v27, %v1108_v10 }
 0x282   : > { %v1195_v55 = vmul.f32 1.442695, %v1177_v40 }
 0x283   : > { %v1118_v4 = vpop.permute.xlu0 %1117  ;;  %v1113_v8 = vpop.permute.xlu1 %1112 }
 0x284   : > { %2393 = vpow2.f32 %v1195_v55  ;;  %v1179_v50 = vsub.f32 %v2905_v32, %v1118_v4  ;;  %v1178_v63 = vsub.f32 %v2900_v31, %v1113_v8 }
 0x286   : > { %v1199_v6 = vmul.f32 1.442695, %v1179_v50  ;;  %v1197_v21 = vmul.f32 1.442695, %v1178_v63 }
 0x287   : > { %v1128_v34 = vpop.permute.xlu0 %1127  ;;  %v1123_v3 = vpop.permute.xlu1 %1122 }
 0x288   : > { %2395 = vpow2.f32 %v1199_v6  ;;  %v1181_v23 = vsub.f32 %v2925_v38, %v1128_v34  ;;  %v1180_v56 = vsub.f32 %v2920_v37, %v1123_v3 }
 0x289   : > { %v2390_v5 = vpop.eup %2389  ;;  %2397 = vpow2.f32 %v1197_v21 }
 0x28a   : > { %v2392_v27 = vpop.eup %2391  ;;  %v1203_v20 = vmul.f32 1.442695, %v1181_v23  ;;  %v1201_v45 = vmul.f32 1.442695, %v1180_v56  ;;  %v1224_v32 = vsel %vm952_vm4, %v2390_v5, 0.0 }
 0x28b   : > { %v1138_v7 = vpop.permute.xlu0 %1137  ;;  %1273 = vadd.xlane.f32.xlu1 %v1224_v32  ;;  %2193 = vmatprep.mubr.msk.f32.mxu1 %vm951_vm5, %v2392_v27  ;;  %v1133_v31 = vpop.permute.xlu1 %1132  ;;  %v1223_v37 = vsel %vm951_vm5, %v2392_v27, 0.0 }
 0x28c   : > { %2399 = vpow2.f32 %v1203_v20  ;;  %v1183_v38 = vsub.f32 %v2943_v43, %v1138_v7  ;;  %v1182_v50 = vsub.f32 %v2938_v42, %v1133_v31  ;;  %2194 = vmatmul.mubr.msk.f32.vlgmr.msra.gmra.mrb[0].mxu1 %vm952_vm4, %v2390_v5  ;;  %1271 = vadd.xlane.f32.xlu0 %v1223_v37  ;;  %vm3493_vm4 = vcmp.eq.s32.totalorder %v2989_v57, %v2857_v16 }
 0x28d   : > { %2401 = vpow2.f32 %v1201_v45  ;;  %vm3494_vm5 = vmmov %vm3493_vm4 }
 0x28e   : > { %v2394_v63 = vpop.eup %2393  ;;  %v1207_v3 = vmul.f32 1.442695, %v1183_v38  ;;  %v1205_v6 = vmul.f32 1.442695, %v1182_v50 }
 0x28f   : > { %v1148_v10 = vpop.permute.xlu0 %1147  ;;  %2196 = vmatprep.mubr.msk.f32.mxu1 %vm953_vm6, %v2394_v63  ;;  %v1143_v12 = vpop.permute.xlu1 %1142  ;;  %v1225_v32 = vsel %vm953_vm6, %v2394_v63, 0.0  ;;  %vm3498_vm6 = vcmask 523264  }
 0x290   : > { %2403 = vpow2.f32 %v1207_v3  ;;  %v1185_v43 = vsub.f32 %v2961_v48, %v1148_v10  ;;  %v1184_v42 = vsub.f32 %v2956_v47, %v1143_v12 }
 0x291   : > { %2405 = vpow2.f32 %v1205_v6 }
 0x292   : > { %v2396_v40 = vpop.eup %2395  ;;  %v1211_v14 = vmul.f32 1.442695, %v1185_v43  ;;  %v1209_v55 = vmul.f32 1.442695, %v1184_v42  ;;  %v3492_v42 = vsub.f32 %v3130_v46, %v3142_v29  ;;  %v3495_v46 = vsub.f32 %v3117_v39, %v3128_v24 }
 0x293   : > { %v2398_v4 = vpop.eup %2397  ;;  %v1158_v8 = vpop.permute.xlu0 %1157  ;;  %v1227_v34 = vsel %vm955_vm8, %v2396_v40, 0.0 }
 0x294   : > { %v1153_v21 = vpop.permute.xlu1 %1152  ;;  %2407 = vpow2.f32 %v1211_v14  ;;  %v1187_v23 = vsub.f32 %v2981_v54, %v1158_v8  ;;  %2197 = vmatmul.mubr.msk.f32.gmra.mrb[2].mxu1 %vm954_vm7, %v2398_v4  ;;  %1279 = vadd.xlane.f32.xlu1 %v1227_v34  ;;  %v1226_v48 = vsel %vm954_vm7, %v2398_v4, 0.0  ;;  %v1091_v29 = vmul.f32 1.442695, %v3495_v46  ;;  %vm3499_vm7 = vmmov %vm3498_vm6 }
 0x295   : > { %v1186_v47 = vsub.f32 %v2976_v53, %v1153_v21  ;;  %2409 = vpow2.f32 %v1209_v55  ;;  %2199 = vmatprep.mubr.msk.f32.mxu1 %vm955_vm8, %v2396_v40  ;;  %1277 = vadd.xlane.f32.xlu0 %v1226_v48  ;;  %v1093_v40 = vmul.f32 1.442695, %v3492_v42 }
 0x296   : > { %v2400_v56 = vpop.eup %2399  ;;  %v1215_v5 = vmul.f32 1.442695, %v1187_v23 }
 0x297   : > { %v1213_v54 = vmul.f32 1.442695, %v1186_v47  ;;  %v2402_v27 = vpop.eup %2401  ;;  %v1168_v20 = vpop.permute.xlu0 %1167  ;;  %v1229_v53 = vsel %vm957_vm10, %v2400_v56, 0.0 }
 0x298   : > { %v1163_v45 = vpop.permute.xlu1 %1162  ;;  %2411 = vpow2.f32 %v1215_v5  ;;  %v1189_v15 = vsub.f32 %v2999_v59, %v1168_v20  ;;  %2200 = vmatmul.mubr.msk.f32.gmra.mrb[4].mxu1 %vm956_vm9, %v2402_v27  ;;  %1283 = vadd.xlane.f32.xlu1 %v1229_v53  ;;  %v1228_v22 = vsel %vm956_vm9, %v2402_v27, 0.0  ;;  %v1240_v5 = vld [vmem:[#allocation3 + $0x8] sm:$0xff]  ;;  %v1239_v27 = vld [vmem:[#allocation3] sm:$0xff] }
 0x299   : > { %v1188_v17 = vsub.f32 %v2994_v58, %v1163_v45  ;;  %2413 = vpow2.f32 %v1213_v54  ;;  %1275 = vadd.xlane.f32.xlu0 %v1225_v32  ;;  %2202 = vmatprep.mubr.msk.f32.mxu1 %vm957_vm10, %v2400_v56  ;;  %v1256_v20 = vmul.f32 %v3144_v1, %v1240_v5  ;;  %v1255_v53 = vmul.f32 %v3155_v0, %v1239_v27 }
 0x29a   : > { %v2404_v7 = vpop.eup %2403  ;;  %v1219_v31 = vmul.f32 1.442695, %v1189_v15 }
 0x29b   : > { %v1217_v59 = vmul.f32 1.442695, %v1188_v17  ;;  %v2406_v37 = vpop.eup %2405  ;;  %v1231_v58 = vsel %vm959_vm12, %v2404_v7, 0.0  ;;  %v3329_v57 = vpop.permute.xlu0 %1359 }
 0x29c   : > { %v1173_v38 = vpop.permute.xlu1 %1172  ;;  %2415 = vpow2.f32 %v1219_v31  ;;  %2203 = vmatmul.mubr.msk.f32.gmra.mrb[6].mxu1 %vm958_vm11, %v2406_v37  ;;  %1287 = vadd.xlane.f32.xlu1 %v1231_v58  ;;  %v1230_v18 = vsel %vm958_vm11, %v2406_v37, 0.0  ;;  %v1242_v31 = vld [vmem:[#allocation3 + $0x18] sm:$0xff]  ;;  %v1245_v58 = vld [vmem:[#allocation3 + $0x30] sm:$0xff] }
 0x29d   : > { %v1190_v13 = vsub.f32 %v3008_v60, %v1173_v38  ;;  %2417 = vpow2.f32 %v1217_v59  ;;  %1281 = vadd.xlane.f32.xlu0 %v1228_v22  ;;  %2205 = vmatprep.mubr.msk.f32.mxu1 %vm959_vm12, %v2404_v7  ;;  %v1243_v7 = vld [vmem:[#allocation3 + $0x20] sm:$0xff]  ;;  %v1258_v37 = vmul.f32 %v3171_v61, %v1242_v31  ;;  %v1241_v22 = vld [vmem:[#allocation3 + $0x10] sm:$0xff]  ;;  %v1261_v0 = vmul.f32 %v3165_v19, %v1245_v58  ;;  %v1252_v31 = vld [vmem:[#allocation3 + $0x68] sm:$0xff] }
 0x29e   : > { %v2408_v50 = vpop.eup %2407  ;;  %v1259_v59 = vmul.f32 %v3157_v2, %v1243_v7  ;;  %v1249_v19 = vld [vmem:[#allocation3 + $0x50] sm:$0xff]  ;;  %v1254_v58 = vld [vmem:[#allocation3 + $0x78] sm:$0xff] }
 0x29f   : > { %v1221_v63 = vmul.f32 1.442695, %v1190_v13  ;;  %v2410_v3 = vpop.eup %2409  ;;  %v1233_v6 = vsel %vm961_vm14, %v2408_v50, 0.0  ;;  %v3333_v21 = vpop.permute.xlu0 %1374 }
 0x2a0   : > { %2206 = vmatmul.mubr.msk.f32.gmra.mrb[8].mxu1 %vm960_vm13, %v2410_v3  ;;  %1291 = vadd.xlane.f32.xlu1 %v1233_v6  ;;  %v1232_v26 = vsel %vm960_vm13, %v2410_v3, 0.0  ;;  %v3323_v49 = vpop.permute.xlu1 %1354  ;;  %v1247_v6 = vld [vmem:[#allocation3 + $0x40] sm:$0xff] }
 0x2a1   : > { %2419 = vpow2.f32 %v1221_v63  ;;  %1285 = vadd.xlane.f32.xlu0 %v1230_v18  ;;  %2208 = vmatprep.mubr.msk.f32.mxu1 %vm961_vm14, %v2408_v50  ;;  %v1257_v63 = vmul.f32 %v3163_v9, %v1241_v22 }
 0x2a2   : > { %v2412_v28 = vpop.eup %2411  ;;  %2421 = vpow2.f32 %v1093_v40 }
 0x2a3   : > { %v2414_v60 = vpop.eup %2413  ;;  %v1235_v10 = vsel %vm963_vm0, %v2412_v28, 0.0  ;;  %2423 = vpow2.f32 %v1091_v29  ;;  %v3337_v24 = vpop.permute.xlu0 %1384 }
 0x2a4   : > { %2209 = vmatmul.mubr.msk.f32.gmra.mrb[10].mxu1 %vm962_vm15, %v2414_v60  ;;  %1295 = vadd.xlane.f32.xlu1 %v1235_v10  ;;  %v1234_v33 = vsel %vm962_vm15, %v2414_v60, 0.0  ;;  %v3325_v4 = vpop.permute.xlu1 %1364  ;;  %v1263_v60 = vmul.f32 %v3173_v11, %v1247_v6  ;;  %v1251_v11 = vld [vmem:[#allocation3 + $0x60] sm:$0xff] }
 0x2a5   : > { %1289 = vadd.xlane.f32.xlu0 %v1232_v26  ;;  %2211 = vmatprep.mubr.msk.f32.mxu1 %vm963_vm0, %v2412_v28  ;;  %v1244_v28 = vld [vmem:[#allocation3 + $0x28] sm:$0xff]  ;;  %v1267_v46 = vmul.f32 %v3186_v62, %v1251_v11 }
 0x2a6   : > { %v2416_v36 = vpop.eup %2415  ;;  %v1260_v10 = vmul.f32 %v3178_v25, %v1244_v28 }
 0x2a7   : > { %v2418_v12 = vpop.eup %2417  ;;  %v1237_v43 = vsel %vm965_vm3, %v2416_v36, 0.0  ;;  %v3341_v23 = vpop.permute.xlu0 %1394 }
 0x2a8   : > { %2212 = vmatmul.mubr.msk.f32.gmra.mrb[12].mxu1 %vm964_vm1, %v2418_v12  ;;  %1299 = vadd.xlane.f32.xlu1 %v1237_v43  ;;  %v1236_v14 = vsel %vm964_vm1, %v2418_v12, 0.0  ;;  %v3327_v16 = vpop.permute.xlu1 %1369  ;;  %v1246_v43 = vld [vmem:[#allocation3 + $0x38] sm:$0xff] }
 0x2a9   : > { %1293 = vadd.xlane.f32.xlu0 %v1234_v33  ;;  %2214 = vmatprep.mubr.msk.f32.mxu1 %vm965_vm3, %v2416_v36  ;;  %v1265_v33 = vmul.f32 %v3180_v51, %v1249_v19  ;;  %v1253_v51 = vld [vmem:[#allocation3 + $0x70] sm:$0xff] }
 0x2ab   : > { %v2420_v44 = vpop.eup %2419  ;;  %v3345_v48 = vpop.permute.xlu0 %1404 }
 0x2ac   : > { %2215 = vmatmul.mubr.msk.f32.gmra.mrb[14].mxu1 %vm3493_vm4, %v2420_v44  ;;  %v1238_v41 = vsel %vm3494_vm5, %v2420_v44, 0.0  ;;  %v3314_v52 = vpop.eup %2421  ;;  %v3331_v8 = vpop.permute.xlu1 %1379  ;;  %v1262_v44 = vmul.f32 %v3184_v35, %v1246_v43 }
 0x2ad   : > { %1297 = vadd.xlane.f32.xlu0 %v1236_v14  ;;  %v3320_v55 = vpop.eup %2423 }
 0x2af   : > { %v3349_v54 = vpop.permute.xlu0 %1414 }
 0x2b0   : > { %v3335_v39 = vpop.permute.xlu1 %1389 }
 0x2b1   : > { %1301 = vadd.xlane.f32.xlu0 %v1238_v41  ;;  %v1248_v41 = vld [vmem:[#allocation3 + $0x48] sm:$0xff] }
 0x2b2   : > { %v1264_v29 = vmul.f32 %v3190_v30, %v1248_v41  ;;  %v3497_v30 = vld [vmem:[#allocation13_spill] sm:$0xff] }
 0x2b3   : > { %v1345_v41 = vld [vmem:[#allocation4 + $0x48] sm:$0xff] }
 0x2b4   : > { %v3339_v34 = vpop.permute.xlu1 %1399 }
 0x2b8   : > { %v3343_v47 = vpop.permute.xlu1 %1409 }
 0x2b9   : > { %1429 = vperm.xlu1 %2360, %v3314_v52  }
 0x2bc   : > { %v3347_v56 = vpop.permute.xlu1 %1419 }
 0x2c7   : > { %1424 = vperm.xlu0 %2359, %v3320_v55  }
 0x318   : > { %v1274_v45 = vpop.xlane.xlu1 %1273 }
 0x319   : > { %v1304_v15 = vadd.f32 %v1274_v45, %v1256_v20  ;;  %v1272_v17 = vpop.xlane.xlu0 %1271  ;;  %v1250_v45 = vld [vmem:[#allocation3 + $0x58] sm:$0xff] }
 0x31a   : > { %v1303_v32 = vadd.f32 %v1272_v17, %v1255_v53  ;;  %v1269_v53 = vmul.f32 %v3320_v55, %v1253_v51  ;;  %v1270_v55 = vmul.f32 %v3314_v52, %v1254_v58  ;;  %v1338_v52 = vld [vmem:[#allocation4 + $0x10] sm:$0xff] }
 0x31b   : > { %1321 = vst.msk [vmem:[#allocation3 + $0x8] sm:$0xff] %vm1319_vm2, %v1304_v15  ;;  %v3496_v15 = vld [vmem:[#allocation12_spill] sm:$0xff] }
 0x31c   : > { %1320 = vst.msk [vmem:[#allocation3] sm:$0xff] %vm1319_vm2, %v1303_v32  ;;  %v1266_v17 = vmul.f32 %v3496_v15, %v1250_v45 }
 0x321   : > { %v1280_v38 = vpop.xlane.xlu1 %1279 }
 0x322   : > { %v1278_v13 = vpop.xlane.xlu0 %1277  ;;  %v1307_v1 = vadd.f32 %v1280_v38, %v1259_v59 }
 0x323   : > { %v1306_v50 = vadd.f32 %v1278_v13, %v1258_v37  ;;  %v1268_v37 = vmul.f32 %v3497_v30, %v1252_v31  ;;  %v1351_v30 = vld [vmem:[#allocation4 + $0x78] sm:$0xff] }
 0x324   : > { %1324 = vst.msk [vmem:[#allocation3 + $0x20] sm:$0xff] %vm1319_vm2, %v1307_v1 }
 0x325   : > { %1323 = vst.msk [vmem:[#allocation3 + $0x18] sm:$0xff] %vm1319_vm2, %v1306_v50  ;;  %v1284_v3 = vpop.xlane.xlu1 %1283  ;;  %v1337_v50 = vld [vmem:[#allocation4 + $0x8] sm:$0xff] }
 0x326   : > { %v1276_v18 = vpop.xlane.xlu0 %1275  ;;  %v1309_v2 = vadd.f32 %v1284_v3, %v1261_v0  ;;  %v1336_v0 = vld [vmem:[#allocation4] sm:$0xff] }
 0x327   : > { %v1305_v61 = vadd.f32 %v1276_v18, %v1257_v63  ;;  %v1433_v63 = vmul.f32 %v3329_v57, %v1337_v50  ;;  %v1432_v3 = vmul.f32 %v3323_v49, %v1336_v0 }
 0x328   : > { %1326 = vst.msk [vmem:[#allocation3 + $0x30] sm:$0xff] %vm1319_vm2, %v1309_v2 }
 0x329   : > { %1322 = vst.msk [vmem:[#allocation3 + $0x10] sm:$0xff] %vm1319_vm2, %v1305_v61  ;;  %v1288_v26 = vpop.xlane.xlu1 %1287  ;;  %v1339_v61 = vld [vmem:[#allocation4 + $0x18] sm:$0xff] }
 0x32a   : > { %v1282_v36 = vpop.xlane.xlu0 %1281  ;;  %v1311_v12 = vadd.f32 %v1288_v26, %v1263_v60  ;;  %v1435_v60 = vmul.f32 %v3327_v16, %v1339_v61  ;;  %v1341_v26 = vld [vmem:[#allocation4 + $0x28] sm:$0xff] }
 0x32b   : > { %v1308_v9 = vadd.f32 %v1282_v36, %v1260_v10  ;;  %v1434_v10 = vmul.f32 %v3325_v4, %v1338_v52  ;;  %v1340_v36 = vld [vmem:[#allocation4 + $0x20] sm:$0xff]  ;;  %v1437_v43 = vmul.f32 %v3331_v8, %v1341_v26 }
 0x32c   : > { %1328 = vst.msk [vmem:[#allocation3 + $0x40] sm:$0xff] %vm1319_vm2, %v1311_v12 }
 0x32d   : > { %1325 = vst.msk [vmem:[#allocation3 + $0x28] sm:$0xff] %vm1319_vm2, %v1308_v9  ;;  %v1292_v42 = vpop.xlane.xlu1 %1291  ;;  %v1436_v9 = vmul.f32 %v3333_v21, %v1340_v36 }
 0x32e   : > { %v1286_v40 = vpop.xlane.xlu0 %1285  ;;  %v1313_v14 = vadd.f32 %v1292_v42, %v1265_v33  ;;  %v1343_v33 = vld [vmem:[#allocation4 + $0x38] sm:$0xff]  ;;  %v1342_v42 = vld [vmem:[#allocation4 + $0x30] sm:$0xff] }
 0x32f   : > { %v1310_v25 = vadd.f32 %v1286_v40, %v1262_v44  ;;  %v1439_v40 = vmul.f32 %v3335_v39, %v1343_v33 }
 0x330   : > { %1330 = vst.msk [vmem:[#allocation3 + $0x50] sm:$0xff] %vm1319_vm2, %v1313_v14  ;;  %v1438_v14 = vmul.f32 %v3337_v24, %v1342_v42 }
 0x331   : > { %1327 = vst.msk [vmem:[#allocation3 + $0x38] sm:$0xff] %vm1319_vm2, %v1310_v25  ;;  %v1296_v5 = vpop.xlane.xlu1 %1295  ;;  %v1344_v25 = vld [vmem:[#allocation4 + $0x40] sm:$0xff] }
 0x332   : > { %v1290_v27 = vpop.xlane.xlu0 %1289  ;;  %v1315_v20 = vadd.f32 %v1296_v5, %v1267_v46  ;;  %v1441_v5 = vmul.f32 %v3339_v34, %v1345_v41  ;;  %v1440_v51 = vmul.f32 %v3341_v23, %v1344_v25 }
 0x333   : > { %v1312_v35 = vadd.f32 %v1290_v27, %v1264_v29  ;;  %v1347_v27 = vld [vmem:[#allocation4 + $0x58] sm:$0xff] }
 0x334   : > { %1332 = vst.msk [vmem:[#allocation3 + $0x60] sm:$0xff] %vm1319_vm2, %v1315_v20  ;;  %v1346_v20 = vld [vmem:[#allocation4 + $0x50] sm:$0xff] }
 0x335   : > { %1329 = vst.msk [vmem:[#allocation3 + $0x48] sm:$0xff] %vm1319_vm2, %v1312_v35  ;;  %v1300_v32 = vpop.xlane.xlu1 %1299  ;;  %v1442_v15 = vmul.f32 %v3345_v48, %v1346_v20  ;;  %v1350_v48 = vld [vmem:[#allocation4 + $0x70] sm:$0xff] }
 0x336   : > { %v1294_v62 = vpop.xlane.xlu0 %1293  ;;  %v1317_v7 = vadd.f32 %v1300_v32, %v1269_v53  ;;  %v1443_v53 = vmul.f32 %v3343_v47, %v1347_v27  ;;  %v1348_v32 = vld [vmem:[#allocation4 + $0x60] sm:$0xff] }
 0x337   : > { %v1314_v59 = vadd.f32 %v1294_v62, %v1266_v17  ;;  %v1349_v17 = vld [vmem:[#allocation4 + $0x68] sm:$0xff] }
 0x338   : > { %1334 = vst.msk [vmem:[#allocation3 + $0x70] sm:$0xff] %vm1319_vm2, %v1317_v7  ;;  %v1445_v31 = vmul.f32 %v3347_v56, %v1349_v17 }
 0x339   : > { %1331 = vst.msk [vmem:[#allocation3 + $0x58] sm:$0xff] %vm1319_vm2, %v1314_v59  ;;  %v1444_v59 = vmul.f32 %v3349_v54, %v1348_v32  ;;  %v1430_v47 = vpop.permute.xlu1 %1429 }
 0x33a   : > { %v1298_v38 = vpop.xlane.xlu0 %1297 }
 0x33b   : > { %v1316_v13 = vadd.f32 %v1298_v38, %v1268_v37 }
 0x33d   : > { %1333 = vst.msk [vmem:[#allocation3 + $0x68] sm:$0xff] %vm1319_vm2, %v1316_v13 }
 0x33e   : > { %v1302_v1 = vpop.xlane.xlu0 %1301 }
 0x33f   : > { %v1318_v22 = vadd.f32 %v1302_v1, %v1270_v55  ;;  %v1447_v1 = vmul.f32 %v1430_v47, %v1351_v30 }
 0x341   : > { %1335 = vst.msk [vmem:[#allocation3 + $0x78] sm:$0xff] %vm1319_vm2, %v1318_v22  ;;  %vm3500_vm2 = vmmov %vm3498_vm6 }
 0x342   : > { %vm3501_vm8 = vmmov %vm3500_vm2 }
 0x343   : > { %vm3502_vm9 = vmmov %vm3500_vm2 }
 0x344   : > { %vm3503_vm10 = vmmov %vm3500_vm2 }
 0x345   : > { %vm3504_vm11 = vmmov %vm3500_vm2 }
 0x346   : > { %vm3505_vm12 = vmmov %vm3500_vm2  ;;  %v1425_v38 = vpop.permute.xlu0 %1424 }
 0x347   : > { %vm3506_vm13 = vmmov %vm3500_vm2  ;;  %v1446_v22 = vmul.f32 %v1425_v38, %v1350_v48 }
 0x348   : > { %vm3507_vm14 = vmmov %vm3500_vm2 }
 0x349   : > { %vm3508_vm15 = vmmov %vm3500_vm2 }
 0x34a   : > { %vm3509_vm0 = vmmov %vm3500_vm2 }
 0x34b   : > { %vm3510_vm1 = vmmov %vm3509_vm0 }
 0x34c   : > { %vm3511_vm3 = vmmov %vm3509_vm0 }
 0x34d   : > { %vm3512_vm4 = vmmov %vm3509_vm0 }
 0x34e   : > { %vm3513_vm5 = vmmov %vm3509_vm0 }
 0x35f   : > { %v2195_v6 = vpop.f32.mrb[0].mxu1 }
 0x360   : > { %v1594_v18 = vadd.f32 %v2195_v6, %v1433_v63  ;;  %v1514_v2 = vpop.f32.mrb[1].mxu1 }
 0x361   : > { %v1593_v28 = vadd.f32 %v1514_v2, %v1432_v3 }
 0x362   : > { %1610 = vst.msk [vmem:[#allocation4 + $0x8] sm:$0xff] %vm3498_vm6, %v1594_v18 }
 0x363   : > { %1609 = vst.msk [vmem:[#allocation4] sm:$0xff] %vm3499_vm7, %v1593_v28 }
 0x367   : > { %v2198_v19 = vpop.f32.mrb[2].mxu1 }
 0x368   : > { %v1596_v57 = vadd.f32 %v2198_v19, %v1435_v60  ;;  %v1524_v12 = vpop.f32.mrb[3].mxu1 }
 0x369   : > { %v1595_v49 = vadd.f32 %v1524_v12, %v1434_v10 }
 0x36a   : > { %1612 = vst.msk [vmem:[#allocation4 + $0x18] sm:$0xff] %vm3500_vm2, %v1596_v57 }
 0x36b   : > { %1611 = vst.msk [vmem:[#allocation4 + $0x10] sm:$0xff] %vm3501_vm8, %v1595_v49  ;;  %v2201_v44 = vpop.f32.mrb[4].mxu1 }
 0x36c   : > { %v1598_v16 = vadd.f32 %v2201_v44, %v1437_v43  ;;  %v1534_v11 = vpop.f32.mrb[5].mxu1 }
 0x36d   : > { %v1597_v4 = vadd.f32 %v1534_v11, %v1436_v9 }
 0x36e   : > { %1614 = vst.msk [vmem:[#allocation4 + $0x28] sm:$0xff] %vm3502_vm9, %v1598_v16 }
 0x36f   : > { %1613 = vst.msk [vmem:[#allocation4 + $0x20] sm:$0xff] %vm3503_vm10, %v1597_v4  ;;  %v2204_v8 = vpop.f32.mrb[6].mxu1 }
 0x370   : > { %v1600_v21 = vadd.f32 %v2204_v8, %v1439_v40  ;;  %v1544_v46 = vpop.f32.mrb[7].mxu1 }
 0x371   : > { %v1599_v29 = vadd.f32 %v1544_v46, %v1438_v14 }
 0x372   : > { %1616 = vst.msk [vmem:[#allocation4 + $0x38] sm:$0xff] %vm3504_vm11, %v1600_v21 }
 0x373   : > { %1615 = vst.msk [vmem:[#allocation4 + $0x30] sm:$0xff] %vm3505_vm12, %v1599_v29  ;;  %v2207_v39 = vpop.f32.mrb[8].mxu1 }
 0x374   : > { %v1602_v24 = vadd.f32 %v2207_v39, %v1441_v5  ;;  %v1554_v45 = vpop.f32.mrb[9].mxu1 }
 0x375   : > { %v1601_v35 = vadd.f32 %v1554_v45, %v1440_v51 }
 0x376   : > { %1618 = vst.msk [vmem:[#allocation4 + $0x48] sm:$0xff] %vm3506_vm13, %v1602_v24 }
 0x377   : > { %1617 = vst.msk [vmem:[#allocation4 + $0x40] sm:$0xff] %vm3507_vm14, %v1601_v35  ;;  %v2210_v34 = vpop.f32.mrb[10].mxu1 }
 0x378   : > { %v1604_v23 = vadd.f32 %v2210_v34, %v1443_v53  ;;  %v1564_v62 = vpop.f32.mrb[11].mxu1 }
 0x379   : > { %v1603_v7 = vadd.f32 %v1564_v62, %v1442_v15 }
 0x37a   : > { %1620 = vst.msk [vmem:[#allocation4 + $0x58] sm:$0xff] %vm3508_vm15, %v1604_v23 }
 0x37b   : > { %1619 = vst.msk [vmem:[#allocation4 + $0x50] sm:$0xff] %vm3509_vm0, %v1603_v7  ;;  %v2213_v37 = vpop.f32.mrb[12].mxu1 }
 0x37c   : > { %v1606_v58 = vadd.f32 %v2213_v37, %v1445_v31  ;;  %v1574_v13 = vpop.f32.mrb[13].mxu1 }
 0x37d   : > { %v1605_v55 = vadd.f32 %v1574_v13, %v1444_v59 }
 0x37e   : > { %1622 = vst.msk [vmem:[#allocation4 + $0x68] sm:$0xff] %vm3510_vm1, %v1606_v58 }
 0x37f   : > { %1621 = vst.msk [vmem:[#allocation4 + $0x60] sm:$0xff] %vm3511_vm3, %v1605_v55  ;;  %v2216_v56 = vpop.f32.mrb[14].mxu1 }
 0x380   : > { %v1608_v50 = vadd.f32 %v2216_v56, %v1447_v1  ;;  %v1584_v0 = vpop.f32.mrb[15].mxu1 }
 0x381   : > { %v1607_v54 = vadd.f32 %v1584_v0, %v1446_v22 }
 0x382   : > { %1624 = vst.msk [vmem:[#allocation4 + $0x78] sm:$0xff] %vm3512_vm4, %v1608_v50 }
 0x383   : > { %1623 = vst.msk [vmem:[#allocation4 + $0x70] sm:$0xff] %vm3513_vm5, %v1607_v54 }
 0x384 PF: > { %p2038_p12 = scmp.ne.s32.totalorder %s2515_s1, 3 }
 0x385   : > { %v1647_v63 = vld [vmem:[#allocation3 + $0x10] sm:$0xff] (!%p2038_p12)  ;;  %v1645_v3 = vld [vmem:[#allocation3] sm:$0xff] (!%p2038_p12)  ;;  %v1648_v6 = vld [vmem:[#allocation3 + $0x18] sm:$0xff] (!%p2038_p12)  ;;  %v2546_v18 = vmov (!%p2038_p12), 0   ;;  %vm1789_vm6 = vcmask (!%p2038_p12), 523264  }
 0x386   : > { %1644 = sbr.rel (%p2038_p12) target bundleno = 1073 (0x431), region = 52  ;;  %2426 = vset.pattern.permute.xlu1 (!%p2038_p12), %v2546_v18  ;;  %2425 = vset.pattern.permute.xlu0 (!%p2038_p12), %v2546_v18  ;;  %2427 = vrcp.f32 (!%p2038_p12), %v1647_v63  ;;  %v1646_v2 = vld [vmem:[#allocation3 + $0x8] sm:$0xff] (!%p2038_p12)  ;;  %v1649_v61 = vld [vmem:[#allocation3 + $0x20] sm:$0xff] (!%p2038_p12)  ;;  %v1652_v52 = vld [vmem:[#allocation3 + $0x38] sm:$0xff] (!%p2038_p12) }
 0x387   : > { %2429 = vrcp.f32 (!%p2038_p12), %v1645_v3  ;;  %v1650_v28 = vld [vmem:[#allocation3 + $0x28] sm:$0xff] (!%p2038_p12)  ;;  %v1651_v60 = vld [vmem:[#allocation3 + $0x30] sm:$0xff] (!%p2038_p12)  ;;  %v1653_v57 = vld [vmem:[#allocation3 + $0x40] sm:$0xff] (!%p2038_p12) }
 0x388   : > { %2431 = vrcp.f32 (!%p2038_p12), %v1648_v6  ;;  %v1654_v19 = vld [vmem:[#allocation3 + $0x48] sm:$0xff] (!%p2038_p12)  ;;  %v1656_v49 = vld [vmem:[#allocation3 + $0x58] sm:$0xff] (!%p2038_p12)  ;;  %v1655_v9 = vld [vmem:[#allocation3 + $0x50] sm:$0xff] (!%p2038_p12) }
 0x389   : > { %2433 = vrcp.f32 (!%p2038_p12), %v1646_v2  ;;  %v1658_v44 = vld [vmem:[#allocation3 + $0x68] sm:$0xff] (!%p2038_p12)  ;;  %v1657_v16 = vld [vmem:[#allocation3 + $0x60] sm:$0xff] (!%p2038_p12)  ;;  %v1660_v4 = vld [vmem:[#allocation3 + $0x78] sm:$0xff] (!%p2038_p12) }
 0x38a   : > { %2435 = vrcp.f32 (!%p2038_p12), %v1650_v28  ;;  %v1659_v14 = vld [vmem:[#allocation3 + $0x70] sm:$0xff] (!%p2038_p12)  ;;  %v1677_v27 = vld [vmem:[#allocation4] sm:$0xff] (!%p2038_p12)  ;;  %v1680_v35 = vld [vmem:[#allocation4 + $0x18] sm:$0xff] (!%p2038_p12) }
 0x38b   : > { %2437 = vrcp.f32 (!%p2038_p12), %v1649_v61  ;;  %v1679_v51 = vld [vmem:[#allocation4 + $0x10] sm:$0xff] (!%p2038_p12)  ;;  %v1678_v53 = vld [vmem:[#allocation4 + $0x8] sm:$0xff] (!%p2038_p12)  ;;  %v1681_v62 = vld [vmem:[#allocation4 + $0x20] sm:$0xff] (!%p2038_p12) }
 0x38c   : > { %2439 = vrcp.f32 (!%p2038_p12), %v1652_v52  ;;  %v1682_v23 = vld [vmem:[#allocation4 + $0x28] sm:$0xff] (!%p2038_p12)  ;;  %v1684_v47 = vld [vmem:[#allocation4 + $0x38] sm:$0xff] (!%p2038_p12)  ;;  %v1683_v37 = vld [vmem:[#allocation4 + $0x30] sm:$0xff] (!%p2038_p12) }
 0x38d   : > { %2441 = vrcp.f32 %v1651_v60  ;;  %v1686_v55 = vld [vmem:[#allocation4 + $0x48] sm:$0xff]  ;;  %v1685_v1 = vld [vmem:[#allocation4 + $0x40] sm:$0xff]  ;;  %v1688_v54 = vld [vmem:[#allocation4 + $0x58] sm:$0xff] }
 0x38e   : > { %2443 = vrcp.f32 %v1654_v19  ;;  %v1687_v63 = vld [vmem:[#allocation4 + $0x50] sm:$0xff]  ;;  %v1690_v28 = vld [vmem:[#allocation4 + $0x68] sm:$0xff]  ;;  %v1689_v61 = vld [vmem:[#allocation4 + $0x60] sm:$0xff] }
 0x38f   : > { %2445 = vrcp.f32 %v1653_v57  ;;  %v1692_v19 = vld [vmem:[#allocation4 + $0x78] sm:$0xff] }
 0x390   : > { %v2428_v10 = vpop.eup %2427  ;;  %2447 = vrcp.f32 %v1656_v49 }
 0x391   : > { %v2430_v26 = vpop.eup %2429  ;;  %1705 = vperm.xlu1 %2426, %v2428_v10   ;;  %2449 = vrcp.f32 %v1655_v9 }
 0x392   : > { %v2432_v36 = vpop.eup %2431  ;;  %1695 = vperm.xlu0 %2425, %v2430_v26   ;;  %2451 = vrcp.f32 %v1658_v44 }
 0x393   : > { %v2434_v12 = vpop.eup %2433  ;;  %2453 = vrcp.f32 %v1657_v16 }
 0x394   : > { %v2436_v43 = vpop.eup %2435  ;;  %2455 = vrcp.f32 %v1660_v4 }
 0x395   : > { %1710 = vperm.xlu1 %2426, %v2432_v36   ;;  %v2438_v33 = vpop.eup %2437  ;;  %2457 = vrcp.f32 %v1659_v14  ;;  %v1691_v36 = vld [vmem:[#allocation4 + $0x70] sm:$0xff] }
 0x396   : > { %1700 = vperm.xlu0 %2425, %v2434_v12   ;;  %v2440_v42 = vpop.eup %2439 }
 0x397   : > { %v2442_v11 = vpop.eup %2441 }
 0x398   : > { %v2444_v40 = vpop.eup %2443 }
 0x399   : > { %1720 = vperm.xlu1 %2426, %v2436_v43   ;;  %v2446_v41 = vpop.eup %2445 }
 0x39a   : > { %1715 = vperm.xlu0 %2425, %v2438_v33   ;;  %v2448_v8 = vpop.eup %2447 }
 0x39b   : > { %v2450_v25 = vpop.eup %2449 }
 0x39c   : > { %v2452_v21 = vpop.eup %2451 }
 0x39d   : > { %1730 = vperm.xlu1 %2426, %v2440_v42   ;;  %v2454_v46 = vpop.eup %2453 }
 0x39e   : > { %1725 = vperm.xlu0 %2425, %v2442_v11   ;;  %v2456_v29 = vpop.eup %2455 }
 0x39f   : > { %v2458_v5 = vpop.eup %2457 }
 0x3a1   : > { %1740 = vperm.xlu1 %2426, %v2444_v40  }
 0x3a2   : > { %1735 = vperm.xlu0 %2425, %v2446_v41  }
 0x3a5   : > { %1750 = vperm.xlu1 %2426, %v2448_v8  }
 0x3a6   : > { %1745 = vperm.xlu0 %2425, %v2450_v25  }
 0x3a9   : > { %1760 = vperm.xlu1 %2426, %v2452_v21  }
 0x3aa   : > { %1755 = vperm.xlu0 %2425, %v2454_v46  }
 0x3ad   : > { %1770 = vperm.xlu1 %2426, %v2456_v29  }
 0x3ae   : > { %1765 = vperm.xlu0 %2425, %v2458_v5  }
 0x410   : > { %v1706_v39 = vpop.permute.xlu1 %1705 }
 0x411   : > { %v1775_v20 = vmul.f32 %v1706_v39, %v1679_v51  ;;  %v1696_v24 = vpop.permute.xlu0 %1695 }
 0x412   : > { %v1773_v45 = vmul.f32 %v1696_v24, %v1677_v27 }
 0x413   : > { %1792 = vst.msk [vmem:[%s2665_s19 + $0x10] sm:$0xff] %vm1789_vm6, %v1775_v20 }
 0x414   : > { %1790 = vst.msk [vmem:[%s2665_s19] sm:$0xff] %vm1789_vm6, %v1773_v45  ;;  %v1711_v15 = vpop.permute.xlu1 %1710 }
 0x415   : > { %v1776_v17 = vmul.f32 %v1711_v15, %v1680_v35  ;;  %v1701_v34 = vpop.permute.xlu0 %1700 }
 0x416   : > { %v1774_v32 = vmul.f32 %v1701_v34, %v1678_v53 }
 0x417   : > { %1793 = vst.msk [vmem:[%s2665_s19 + $0x18] sm:$0xff] %vm1789_vm6, %v1776_v17 }
 0x418   : > { %1791 = vst.msk [vmem:[%s2665_s19 + $0x8] sm:$0xff] %vm1789_vm6, %v1774_v32  ;;  %v1721_v7 = vpop.permute.xlu1 %1720 }
 0x419   : > { %v1778_v31 = vmul.f32 %v1721_v7, %v1682_v23  ;;  %v1716_v59 = vpop.permute.xlu0 %1715 }
 0x41a   : > { %v1777_v30 = vmul.f32 %v1716_v59, %v1681_v62 }
 0x41b   : > { %1795 = vst.msk [vmem:[%s2665_s19 + $0x28] sm:$0xff] %vm1789_vm6, %v1778_v31 }
 0x41c   : > { %1794 = vst.msk [vmem:[%s2665_s19 + $0x20] sm:$0xff] %vm1789_vm6, %v1777_v30  ;;  %v1731_v48 = vpop.permute.xlu1 %1730 }
 0x41d   : > { %v1780_v38 = vmul.f32 %v1731_v48, %v1684_v47  ;;  %v1726_v58 = vpop.permute.xlu0 %1725 }
 0x41e   : > { %v1779_v13 = vmul.f32 %v1726_v58, %v1683_v37 }
 0x41f   : > { %1797 = vst.msk [vmem:[%s2665_s19 + $0x38] sm:$0xff] %vm1789_vm6, %v1780_v38 }
 0x420   : > { %1796 = vst.msk [vmem:[%s2665_s19 + $0x30] sm:$0xff] %vm1789_vm6, %v1779_v13  ;;  %v1741_v22 = vpop.permute.xlu1 %1740 }
 0x421   : > { %v1782_v56 = vmul.f32 %v1741_v22, %v1686_v55  ;;  %v1736_v50 = vpop.permute.xlu0 %1735 }
 0x422   : > { %v1781_v0 = vmul.f32 %v1736_v50, %v1685_v1 }
 0x423   : > { %1799 = vst.msk [vmem:[%s2665_s19 + $0x48] sm:$0xff] %vm1789_vm6, %v1782_v56 }
 0x424   : > { %1798 = vst.msk [vmem:[%s2665_s19 + $0x40] sm:$0xff] %vm1789_vm6, %v1781_v0  ;;  %v1751_v3 = vpop.permute.xlu1 %1750 }
 0x425   : > { %v1784_v6 = vmul.f32 %v1751_v3, %v1688_v54  ;;  %v1746_v18 = vpop.permute.xlu0 %1745 }
 0x426   : > { %v1783_v2 = vmul.f32 %v1746_v18, %v1687_v63 }
 0x427   : > { %1801 = vst.msk [vmem:[%s2665_s19 + $0x58] sm:$0xff] %vm1789_vm6, %v1784_v6 }
 0x428   : > { %1800 = vst.msk [vmem:[%s2665_s19 + $0x50] sm:$0xff] %vm1789_vm6, %v1783_v2  ;;  %v1761_v52 = vpop.permute.xlu1 %1760 }
 0x429   : > { %v1786_v60 = vmul.f32 %v1761_v52, %v1690_v28  ;;  %v1756_v10 = vpop.permute.xlu0 %1755 }
 0x42a   : > { %v1785_v26 = vmul.f32 %v1756_v10, %v1689_v61 }
 0x42b   : > { %1803 = vst.msk [vmem:[%s2665_s19 + $0x68] sm:$0xff] %vm1789_vm6, %v1786_v60 }
 0x42c   : > { %1802 = vst.msk [vmem:[%s2665_s19 + $0x60] sm:$0xff] %vm1789_vm6, %v1785_v26  ;;  %v1771_v57 = vpop.permute.xlu1 %1770 }
 0x42d   : > { %v1788_v12 = vmul.f32 %v1771_v57, %v1692_v19  ;;  %v1766_v49 = vpop.permute.xlu0 %1765 }
 0x42e   : > { %v1787_v43 = vmul.f32 %v1766_v49, %v1691_v36 }
 0x42f   : > { %1805 = vst.msk [vmem:[%s2665_s19 + $0x78] sm:$0xff] %vm1789_vm6, %v1788_v12 }
 0x430   : > { %1804 = vst.msk [vmem:[%s2665_s19 + $0x70] sm:$0xff] %vm1789_vm6, %v1787_v43 }
 0x431 PF: > { %s27_s15 = sadd.s32 1, %s2539_s15   ;;  %s3514_s2 = sld [smem:[#allocation9_spill]] }
 0x432   : > { %p24_p13 = scmp.ge.s32.totalorder %s27_s15, 66   ;;  %s3515_s17 = sld [smem:[#allocation10_spill]] }
 0x433   : > { %s3516_s18 = sld [smem:[#allocation11_spill]]  ;;  %s3517_s1 = smov %s2527_s12 }
 0x434   : > { %s3518_s10 = smov %s2531_s13  ;;  %s3519_s11 = smov %s2535_s14 }
 0x435   :  { %26 = sbr.rel (!%p24_p13) target bundleno = 31 (0x1f), region = 94 }
 0x437   : > { %s3520_s12 = smov %s3514_s2 }
 0x438   : > { %s3521_s13 = smov %s3515_s17 }
 0x439   : > { %s3522_s14 = smov %s3516_s18 }

</bundles_post_ra>
